<compile_context>
chip_gen: v7x
topology: tpu7x:2x2x1
jax: 0.10.0
libtpu: 0.0.40
codegen_flags: <defaults>
</compile_context>

<pallas_src>
import jax
import jax.numpy as jnp
from jax.experimental import pallas as pl
from jax.experimental.pallas import tpu as pltpu


def _leaky_relu(x, slope=0.2):
    return jnp.where(x > 0, x, slope * x)


def _round_up(x, m):
    return (x + m - 1) // m * m


def discriminator_kernel(x_ref, w1_ref, b1_ref, w2_ref, b2_ref, w3_ref, b3_ref,
                         out_ref):
    # Layer 1: bf16 MXU matmul, f32 accumulation, bias + LeakyReLU in f32.
    h1 = jnp.dot(x_ref[...], w1_ref[...], preferred_element_type=jnp.float32)
    h1 = _leaky_relu(h1 + b1_ref[...])

    # Layer 2: recast activations to bf16 for the MXU, accumulate in f32.
    h2 = jnp.dot(h1.astype(jnp.bfloat16), w2_ref[...],
                 preferred_element_type=jnp.float32)
    h2 = _leaky_relu(h2 + b2_ref[...])

    # Layer 3 (N=1): VPU multiply + XLU lane reduction instead of an MXU GEMV.
    out = jnp.sum(h2 * w3_ref[...], axis=-1, keepdims=True) + b3_ref[...]
    out_ref[...] = out.astype(out_ref.dtype)


def _resident(shape):
    """BlockSpec for an array whose (single) block stays VMEM-resident."""
    return pl.BlockSpec(shape, lambda i: (0,) * len(shape))


def _vmem_limit_bytes(D, tb):
    weights = (D * 512 + 512 * 256) * 2            # bf16 W1, W2
    weights += (512 + 256 + 256 + 1) * 4           # f32 b1, b2, w3 row, b3
    io_tiles = 2 * (tb * D * 2 + tb * 4)           # double-buffered x in, out
    act = tb * (512 + 256) * 4 + tb * 512 * 2      # f32 h1/h2 + bf16 recast
    return min(int(weights + io_tiles + 2 * act) + (8 << 20), 120 << 20)


def discriminator_forward(img, params, *, tb=256):
    """img: (B, C, H, W) float32.  Returns validity (B, 1) float32."""
    w1, b1, w2, b2, w3_row, b3 = params
    B = img.shape[0]
    D = w1.shape[0]

    # Same as torch img.view(B, -1): NCHW row-major flatten.  Cast to bf16 in
    # the wrapper so only bf16 activation bytes cross HBM into the kernel.
    x = img.reshape(B, -1).astype(jnp.bfloat16)
    assert x.shape[1] == D

    # Sublane-aligned batch tile (bf16 packs 16 rows / vreg); pad B up to it.
    tb = min(tb, _round_up(B, 16))
    B_pad = _round_up(B, tb)
    if B_pad != B:
        x = jnp.pad(x, ((0, B_pad - B), (0, 0)))
    grid = (B_pad // tb,)

    out = pl.pallas_call(
        discriminator_kernel,
        out_shape=jax.ShapeDtypeStruct((B_pad, 1), jnp.float32),
        grid=grid,
        in_specs=[
            pl.BlockSpec((tb, D), lambda i: (i, 0)),   # x tile per grid step
            _resident((D, 512)),                       # W1 (bf16)
            _resident((1, 512)),                       # b1 (f32)
            _resident((512, 256)),                     # W2 (bf16)
            _resident((1, 256)),                       # b2 (f32)
            _resident((1, 256)),                       # W3 as a row (f32)
            _resident((1, 1)),                         # b3 (f32)
        ],
        out_specs=pl.BlockSpec((tb, 1), lambda i: (i, 0)),
        compiler_params=pltpu.CompilerParams(
            dimension_semantics=("parallel",),
            vmem_limit_bytes=_vmem_limit_bytes(D, tb),
        ),
    )(x, w1, b1, w2, b2, w3_row, b3)
    return out[:B]


def init_params(key, in_dim):
    """PyTorch-Linear-style init (uniform +-1/sqrt(fan_in)).

    W1/W2 stored (in, out) in bf16; biases f32; W3 stored as a (1, 256) f32
    row (used via a reduction, not an MXU matmul); b3 as (1, 1) f32."""
    dims = [(in_dim, 512), (512, 256), (256, 1)]
    params = []
    for li, (fan_in, fan_out) in enumerate(dims):
        key, kw, kb = jax.random.split(key, 3)
        bound = 1.0 / (fan_in ** 0.5)
        w = jax.random.uniform(kw, (fan_in, fan_out), jnp.float32, -bound, bound)
        b = jax.random.uniform(kb, (1, fan_out), jnp.float32, -bound, bound)
        if li < 2:
            params += [w.astype(jnp.bfloat16), b]
        else:
            params += [w.T, b]  # (1, 256) f32 row, (1, 1) f32
    return tuple(params)


def reference_forward_bf16(img, params):
    """Same dtype pipeline as the kernel (bf16 inputs, f32 accumulation)."""
    w1, b1, w2, b2, w3_row, b3 = params
    x = img.reshape(img.shape[0], -1).astype(jnp.bfloat16)
    h1 = jnp.dot(x, w1, preferred_element_type=jnp.float32) + b1
    h1 = _leaky_relu(h1)
    h2 = jnp.dot(h1.astype(jnp.bfloat16), w2,
                 preferred_element_type=jnp.float32) + b2
    h2 = _leaky_relu(h2)
    return jnp.sum(h2 * w3_row, axis=-1, keepdims=True) + b3


def reference_forward_f32(img, params):
    """Full-f32 reference (matches the original PyTorch semantics)."""
    w1, b1, w2, b2, w3_row, b3 = params
    x = img.reshape(img.shape[0], -1)
    h1 = _leaky_relu(x @ w1.astype(jnp.float32) + b1)
    h2 = _leaky_relu(h1 @ w2.astype(jnp.float32) + b2)
    return h2 @ w3_row.T + b3


if __name__ == "__main__":
    # Small shapes consistent with the module: channels=4, img_size=16 -> D=1024
    B, C, H, W = 2, 4, 16, 16
    key = jax.random.PRNGKey(0)
    k_img, k_par = jax.random.split(key)

    img = jax.random.normal(k_img, (B, C, H, W), jnp.float32)
    params = init_params(k_par, C * H * W)

    out = discriminator_forward(img, params)
    out = jax.block_until_ready(out)
    assert out.shape == (B, 1), out.shape

    # Strict check against a same-precision (bf16-matmul) reference.
    ref_bf16 = reference_forward_bf16(img, params)
    assert jnp.allclose(out, ref_bf16, atol=5e-3, rtol=5e-3), (out, ref_bf16)

    # Loose check against the full-f32 PyTorch-equivalent forward.
    ref_f32 = reference_forward_f32(img, params)
    assert jnp.allclose(out, ref_f32, atol=5e-2, rtol=5e-2), (out, ref_f32)

    print("KERNEL_OK")
</pallas_src>

<mosaic_0001>
module attributes {stable_mosaic.version = 11 : i64} {
  func.func @discriminator_kernel(%arg0: i32, %arg1: memref<16x1024xbf16, #tpu.memory_space<vmem>>, %arg2: memref<1024x512xbf16, #tpu.memory_space<vmem>>, %arg3: memref<1x512xf32, #tpu.memory_space<vmem>>, %arg4: memref<512x256xbf16, #tpu.memory_space<vmem>>, %arg5: memref<1x256xf32, #tpu.memory_space<vmem>>, %arg6: memref<1x256xf32, #tpu.memory_space<vmem>>, %arg7: memref<1x1xf32, #tpu.memory_space<vmem>>, %arg8: memref<16x1xf32, #tpu.memory_space<vmem>>) attributes {dimension_semantics = [#tpu.dimension_semantics<parallel>], iteration_bounds = array<i64: 1>, scalar_prefetch = 0 : i64, scratch_operands = 0 : i64, tpu.core_type = #tpu.core_type<tc>, window_params = [{transform_indices = @transform_0, window_bounds = array<i64: 16, 1024>}, {pipeline_mode = #tpu.pipeline_mode<synchronous>, transform_indices = @transform_1, window_bounds = array<i64: 1024, 512>}, {pipeline_mode = #tpu.pipeline_mode<synchronous>, transform_indices = @transform_2, window_bounds = array<i64: 1, 512>}, {pipeline_mode = #tpu.pipeline_mode<synchronous>, transform_indices = @transform_3, window_bounds = array<i64: 512, 256>}, {pipeline_mode = #tpu.pipeline_mode<synchronous>, transform_indices = @transform_4, window_bounds = array<i64: 1, 256>}, {pipeline_mode = #tpu.pipeline_mode<synchronous>, transform_indices = @transform_5, window_bounds = array<i64: 1, 256>}, {pipeline_mode = #tpu.pipeline_mode<synchronous>, transform_indices = @transform_6, window_bounds = array<i64: 1, 1>}, {transform_indices = @transform_7, window_bounds = array<i64: 16, 1>}]} {
    %c0 = arith.constant 0 : index
    %c0_0 = arith.constant 0 : index
    %0 = vector.load %arg1[%c0, %c0_0] : memref<16x1024xbf16, #tpu.memory_space<vmem>>, vector<16x1024xbf16>
    %c0_1 = arith.constant 0 : index
    %c0_2 = arith.constant 0 : index
    %1 = vector.load %arg2[%c0_1, %c0_2] : memref<1024x512xbf16, #tpu.memory_space<vmem>>, vector<1024x512xbf16>
    %cst = arith.constant dense<0.000000e+00> : vector<16x512xf32>
    %2 = tpu.matmul %0, %1, %cst {dimension_numbers = #tpu.dot_dimension_numbers<[1], [0], [0], [1], [0, 0, 1, 1], [], []>} : vector<16x1024xbf16>, vector<1024x512xbf16>, vector<16x512xf32> -> vector<16x512xf32>
    %c0_3 = arith.constant 0 : index
    %c0_4 = arith.constant 0 : index
    %3 = vector.load %arg3[%c0_3, %c0_4] : memref<1x512xf32, #tpu.memory_space<vmem>>, vector<1x512xf32>
    %4 = vector.broadcast %3 : vector<1x512xf32> to vector<16x512xf32>
    %5 = arith.addf %2, %4 : vector<16x512xf32>
    %cst_5 = arith.constant 0.000000e+00 : f32
    %6 = vector.broadcast %cst_5 : f32 to vector<16x512xf32>
    %7 = arith.cmpf ogt, %5, %6 : vector<16x512xf32>
    %cst_6 = arith.constant 2.000000e-01 : f32
    %8 = vector.broadcast %cst_6 : f32 to vector<16x512xf32>
    %9 = arith.mulf %8, %5 : vector<16x512xf32>
    %10 = arith.select %7, %5, %9 : vector<16x512xi1>, vector<16x512xf32>
    %11 = arith.truncf %10 : vector<16x512xf32> to vector<16x512xbf16>
    %c0_7 = arith.constant 0 : index
    %c0_8 = arith.constant 0 : index
    %12 = vector.load %arg4[%c0_7, %c0_8] : memref<512x256xbf16, #tpu.memory_space<vmem>>, vector<512x256xbf16>
    %cst_9 = arith.constant dense<0.000000e+00> : vector<16x256xf32>
    %13 = tpu.matmul %11, %12, %cst_9 {dimension_numbers = #tpu.dot_dimension_numbers<[1], [0], [0], [1], [0, 0, 1, 1], [], []>} : vector<16x512xbf16>, vector<512x256xbf16>, vector<16x256xf32> -> vector<16x256xf32>
    %c0_10 = arith.constant 0 : index
    %c0_11 = arith.constant 0 : index
    %14 = vector.load %arg5[%c0_10, %c0_11] : memref<1x256xf32, #tpu.memory_space<vmem>>, vector<1x256xf32>
    %15 = vector.broadcast %14 : vector<1x256xf32> to vector<16x256xf32>
    %16 = arith.addf %13, %15 : vector<16x256xf32>
    %cst_12 = arith.constant 0.000000e+00 : f32
    %17 = vector.broadcast %cst_12 : f32 to vector<16x256xf32>
    %18 = arith.cmpf ogt, %16, %17 : vector<16x256xf32>
    %cst_13 = arith.constant 2.000000e-01 : f32
    %19 = vector.broadcast %cst_13 : f32 to vector<16x256xf32>
    %20 = arith.mulf %19, %16 : vector<16x256xf32>
    %21 = arith.select %18, %16, %20 : vector<16x256xi1>, vector<16x256xf32>
    %c0_14 = arith.constant 0 : index
    %c0_15 = arith.constant 0 : index
    %22 = vector.load %arg6[%c0_14, %c0_15] : memref<1x256xf32, #tpu.memory_space<vmem>>, vector<1x256xf32>
    %23 = vector.broadcast %22 : vector<1x256xf32> to vector<16x256xf32>
    %24 = arith.mulf %21, %23 : vector<16x256xf32>
    %cst_16 = arith.constant dense<0.000000e+00> : vector<16xf32>
    %25 = vector.multi_reduction <add>, %24, %cst_16 [1] : vector<16x256xf32> to vector<16xf32>
    %26 = vector.shape_cast %25 : vector<16xf32> to vector<16x1xf32>
    %c0_17 = arith.constant 0 : index
    %c0_18 = arith.constant 0 : index
    %27 = vector.load %arg7[%c0_17, %c0_18] : memref<1x1xf32, #tpu.memory_space<vmem>>, vector<1x1xf32>
    %28 = vector.broadcast %27 : vector<1x1xf32> to vector<16x1xf32>
    %29 = arith.addf %26, %28 : vector<16x1xf32>
    %c0_19 = arith.constant 0 : index
    %c0_20 = arith.constant 0 : index
    %30 = vector.load %arg8[%c0_19, %c0_20] : memref<16x1xf32, #tpu.memory_space<vmem>>, vector<16x1xf32>
    tpu.vector_store %arg8[%c0_19, %c0_20], %29 {strides = array<i32>} : memref<16x1xf32, #tpu.memory_space<vmem>>, vector<16x1xf32>,
    return
  }
  func.func @transform_0(%arg0: i32) -> (i32, i32) {
    %c0_i32 = arith.constant 0 : i32
    %c0_i32_0 = arith.constant 0 : i32
    return %arg0, %c0_i32 : i32, i32
  }
  func.func @transform_1(%arg0: i32) -> (i32, i32) {
    %c0_i32 = arith.constant 0 : i32
    %c0_i32_0 = arith.constant 0 : i32
    %c0_i32_1 = arith.constant 0 : i32
    return %c0_i32, %c0_i32_0 : i32, i32
  }
  func.func @transform_2(%arg0: i32) -> (i32, i32) {
    %c0_i32 = arith.constant 0 : i32
    %c0_i32_0 = arith.constant 0 : i32
    %c0_i32_1 = arith.constant 0 : i32
    return %c0_i32, %c0_i32_0 : i32, i32
  }
  func.func @transform_3(%arg0: i32) -> (i32, i32) {
    %c0_i32 = arith.constant 0 : i32
    %c0_i32_0 = arith.constant 0 : i32
    %c0_i32_1 = arith.constant 0 : i32
    return %c0_i32, %c0_i32_0 : i32, i32
  }
  func.func @transform_4(%arg0: i32) -> (i32, i32) {
    %c0_i32 = arith.constant 0 : i32
    %c0_i32_0 = arith.constant 0 : i32
    %c0_i32_1 = arith.constant 0 : i32
    return %c0_i32, %c0_i32_0 : i32, i32
  }
  func.func @transform_5(%arg0: i32) -> (i32, i32) {
    %c0_i32 = arith.constant 0 : i32
    %c0_i32_0 = arith.constant 0 : i32
    %c0_i32_1 = arith.constant 0 : i32
    return %c0_i32, %c0_i32_0 : i32, i32
  }
  func.func @transform_6(%arg0: i32) -> (i32, i32) {
    %c0_i32 = arith.constant 0 : i32
    %c0_i32_0 = arith.constant 0 : i32
    %c0_i32_1 = arith.constant 0 : i32
    return %c0_i32, %c0_i32_0 : i32, i32
  }
  func.func @transform_7(%arg0: i32) -> (i32, i32) {
    %c0_i32 = arith.constant 0 : i32
    %c0_i32_0 = arith.constant 0 : i32
    return %arg0, %c0_i32 : i32, i32
  }
}

</mosaic_0001>

<bundles_post_ra>
// kernel: tpu_custom_call.1
= control target key start
LH: loop header
LB: loop body
LE: loop exit
PB: predicated region body
PF: predicated region fallthrough
CT: control target
= control target key end

     0   :  { %s3687_s0 = inlined_call_operand.hbm [shape: bf16[16,1024], index: 0, kind: input, shape index: {}]   ;;  %s3688_s1 = inlined_call_operand.hbm [shape: bf16[1024,512], index: 1, kind: input, shape index: {}]   ;;  %s3689_s2 = inlined_call_operand.vmem [shape: f32[1,512], index: 2, kind: input, shape index: {}]   ;;  %s3690_s3 = inlined_call_operand.hbm [shape: bf16[512,256], index: 3, kind: input, shape index: {}]   ;;  %s3691_s4 = inlined_call_operand.vmem [shape: f32[1,256], index: 4, kind: input, shape index: {}]   ;;  %s3692_s5 = inlined_call_operand.vmem [shape: f32[1,256], index: 5, kind: input, shape index: {}]   ;;  %s3693_s6 = inlined_call_operand.<no memory space> [shape: f32[1,1], index: 6, kind: input, shape index: {}]   ;;  %s3694_s7 = inlined_call_operand.vmem [shape: f32[16,1], index: 7, kind: output, shape index: {}]  }
   0x1   :  { %v12_v0 = vstv %s3693_s6 }
   0x2   :  { %13 = vst [vmem:[#allocation2] sm:$0x1] %v12_v0 }
   0x3   :  { %14 = vsyncpa [#allocation4], 0 }
   0x4   :  { %15 = vsyncpa [#allocation6], 0  ;;  %s3509_s26 = smov [#allocation5]   ;;  %s3439_s30 = scalar_lea.hbm %s3688_s1, 32768 }
   0x5   :  { %s33_s27 = sshll.u32 %s3509_s26, 4  ;;  %p3440_p0 = scmp.ne.s32.totalorder %s3688_s1, %s3439_s30  ;;  %s34_s27 = int_to_ptr.vmem [resolvable:$true] %s33_s27 }
   0x6   :  { %p3443_p1 = scmp.lt.u32.totalorder %s3439_s30, %s3688_s1 }
   0x8   :  { %p3445_p2 = pnand %p3443_p1, %p3440_p0 }
   0xa   :  { %3448 = shalt.err (!%p3445_p2)
}
   0xb   :  { %s3449_s6 = scalar_lea.vmem %s34_s27, 32768  ;;  %p3454_p4 = scmp.lt.s32.totalorder %s34_s27, %s34_s27 }
   0xc   :  { %p3450_p3 = scmp.ne.s32.totalorder %s34_s27, %s3449_s6  ;;  %p3455_p5 = scmp.lt.s32.totalorder %s3449_s6, %s3449_s6 }
   0xe   :  { %p3456_p6 = por %p3455_p5, %p3454_p4 }
  0x10   :  { %p3457_p7 = pnand %p3456_p6, %p3450_p3 }
  0x12   :  { %3460 = shalt.err (!%p3457_p7)
}
  0x13   :  { %s3510_s12 = smov 256   ;;  %s3511_s13 = smov 16  }
  0x14   :  { %39 = dma.hbm_to_vmem [thread:$0]  %s3688_s1, 32768, %s34_s27, [#allocation6], %s3510_s12, %s3510_s12, %s3511_s13  }
  0x15   :  { %s3512_s16 = smov [#allocation3]   ;;  %s3461_s20 = scalar_lea.hbm %s3687_s0, 1024 }
  0x16   :  { %s21_s17 = sshll.u32 %s3512_s16, 4  ;;  %p3462_p8 = scmp.ne.s32.totalorder %s3687_s0, %s3461_s20  ;;  %s22_s17 = int_to_ptr.vmem [resolvable:$true] %s21_s17 }
  0x17   :  { %p3465_p9 = scmp.lt.u32.totalorder %s3461_s20, %s3687_s0 }
  0x19   :  { %p3467_p10 = pnand %p3465_p9, %p3462_p8 }
  0x1b   :  { %3470 = shalt.err (!%p3467_p10)
}
  0x1c   :  { %s3471_s25 = scalar_lea.vmem %s22_s17, 1024  ;;  %p3476_p12 = scmp.lt.s32.totalorder %s22_s17, %s22_s17 }
  0x1d   :  { %p3472_p11 = scmp.ne.s32.totalorder %s22_s17, %s3471_s25  ;;  %p3477_p13 = scmp.lt.s32.totalorder %s3471_s25, %s3471_s25 }
  0x1f   :  { %p3478_p0 = por %p3477_p13, %p3476_p12 }
  0x21   :  { %p3479_p1 = pnand %p3478_p0, %p3472_p11 }
  0x23   :  { %3482 = shalt.err (!%p3479_p1)
}
  0x24   :  { %s3513_s1 = smov 512   ;;  %s3514_s26 = smov 32  }
  0x25   :  { %27 = dma.hbm_to_vmem [thread:$0]  %s3687_s0, 1024, %s22_s17, [#allocation4], %s3513_s1, %s3513_s1, %s3514_s26  }
  0x26   :  { %s3515_s29 = smov [#allocation7]   ;;  %s3483_s10 = scalar_lea.hbm %s3690_s3, 8192 }
  0x27   :  { %s47_s30 = sshll.u32 %s3515_s29, 4  ;;  %p3484_p2 = scmp.ne.s32.totalorder %s3690_s3, %s3483_s10  ;;  %s48_s30 = int_to_ptr.vmem [resolvable:$true] %s47_s30 }
  0x28   :  { %p3487_p3 = scmp.lt.u32.totalorder %s3483_s10, %s3690_s3 }
  0x2a   :  { %p3489_p4 = pnand %p3487_p3, %p3484_p2 }
  0x2c   :  { %3492 = shalt.err (!%p3489_p4)
}
  0x2d   :  { %s3493_s14 = scalar_lea.vmem %s48_s30, 8192  ;;  %p3498_p6 = scmp.lt.s32.totalorder %s48_s30, %s48_s30 }
  0x2e   :  { %p3494_p5 = scmp.ne.s32.totalorder %s48_s30, %s3493_s14  ;;  %p3499_p7 = scmp.lt.s32.totalorder %s3493_s14, %s3493_s14 }
  0x30   :  { %p3500_p8 = por %p3499_p7, %p3498_p6 }
  0x32   :  { %p3501_p9 = pnand %p3500_p8, %p3494_p5 }
  0x34   :  { %3504 = shalt.err (!%p3501_p9)
}
  0x35   :  { %s3516_s0 = smov 128   ;;  %s3517_s15 = smov 8  }
  0x36   :  { %53 = dma.hbm_to_vmem [thread:$0]  %s3690_s3, 8192, %s48_s30, [#allocation6], %s3516_s0, %s3516_s0, %s3517_s15  }
  0x37   :  { %3505 = dma.done.wait [#allocation4], 1024  }
  0x38   :  { %3506 = vsyncadd [#allocation4], 4294966272 }
  0x39   :  { %3507 = dma.done.wait [#allocation6], 40960  }
  0x3a   :  { %3508 = vsyncadd [#allocation6], 4294926336  ;;  %v2959_v1 = vld [vmem:[#allocation5 + $0x4] ss:$16 sps:$4 sm:$0xff]   ;;  %v2963_v3 = vld [vmem:[#allocation5] ss:$16 sps:$4 sm:$0xff]  }
  0x3b   :  { %v2961_v2 = vld [vmem:[#allocation5 + $0x204] ss:$16 sps:$4 sm:$0xff]   ;;  %1675 = vmatprep.subr.bf16.mxu1 %v2959_v1  ;;  %v2964_v4 = vld [vmem:[#allocation5 + $0x200] ss:$16 sps:$4 sm:$0xff]   ;;  %v70_v51 = vld [vmem:[#allocation3 + $0x8] sm:$0xff]  ;;  %vm2572_vm12 = vcmask 7168  }
  0x3c   :  { %1718 = vmatprep.subr.bf16.mxu0 %v2961_v2  ;;  %v2965_v5 = vld [vmem:[#allocation5 + $0x24] ss:$16 sps:$4 sm:$0xff]   ;;  %1676 = vmatpush1.bf16.msra.mxu1 %v2963_v3  ;;  %v2969_v7 = vld [vmem:[#allocation5 + $0x20] ss:$16 sps:$4 sm:$0xff]   ;;  %v74_v52 = vld [vmem:[#allocation3 + $0x28] sm:$0xff] }
  0x3d   :  { %1719 = vmatpush1.bf16.msra.mxu0 %v2964_v4  ;;  %v2967_v6 = vld [vmem:[#allocation5 + $0x224] ss:$16 sps:$4 sm:$0xff]   ;;  %1677 = vmatprep.subr.bf16.mxu1 %v2965_v5  ;;  %v2970_v8 = vld [vmem:[#allocation5 + $0x220] ss:$16 sps:$4 sm:$0xff]   ;;  %v3597_v56 = vcombine.high %v70_v51, %v74_v52 }
  0x3e   :  { %1720 = vmatprep.subr.bf16.mxu0 %v2967_v6  ;;  %v2971_v9 = vld [vmem:[#allocation5 + $0x44] ss:$16 sps:$4 sm:$0xff]   ;;  %v2975_v11 = vld [vmem:[#allocation5 + $0x40] ss:$16 sps:$4 sm:$0xff]  }
  0x3f   :  { %v2973_v10 = vld [vmem:[#allocation5 + $0x244] ss:$16 sps:$4 sm:$0xff]   ;;  %v2976_v12 = vld [vmem:[#allocation5 + $0x240] ss:$16 sps:$4 sm:$0xff]   ;;  %1750 = vmatprep.mubr.bf16.mxu0 %v3597_v56 }
  0x40   :  { %1678 = vmatpush1.bf16.msra.mxu1 %v2969_v7  ;;  %v2977_v13 = vld [vmem:[#allocation5 + $0x64] ss:$16 sps:$4 sm:$0xff]   ;;  %v2981_v15 = vld [vmem:[#allocation5 + $0x60] ss:$16 sps:$4 sm:$0xff]  }
  0x41   :  { %1721 = vmatpush1.bf16.msra.mxu0 %v2970_v8  ;;  %1679 = vmatprep.subr.bf16.mxu1 %v2971_v9  ;;  %v2979_v14 = vld [vmem:[#allocation5 + $0x264] ss:$16 sps:$4 sm:$0xff]   ;;  %v2982_v16 = vld [vmem:[#allocation5 + $0x260] ss:$16 sps:$4 sm:$0xff]   ;;  %v3060_v8 = vld [vmem:[#allocation5 + $0xc] ss:$16 sps:$4 sm:$0xff]  }
  0x42   :  { %1722 = vmatprep.subr.bf16.mxu0 %v2973_v10  ;;  %v2983_v17 = vld [vmem:[#allocation5 + $0x84] ss:$16 sps:$4 sm:$0xff]   ;;  %v2987_v19 = vld [vmem:[#allocation5 + $0x80] ss:$16 sps:$4 sm:$0xff]   ;;  %v3602_v10 = vcombine.low %v70_v51, %v74_v52  ;;  %v3112_v51 = vld [vmem:[#allocation5 + $0x128] ss:$16 sps:$4 sm:$0xff]  }
  0x43   :  { %v2985_v18 = vld [vmem:[#allocation5 + $0x284] ss:$16 sps:$4 sm:$0xff]   ;;  %v2988_v20 = vld [vmem:[#allocation5 + $0x280] ss:$16 sps:$4 sm:$0xff]  }
  0x44   :  { %1680 = vmatpush1.bf16.msra.mxu1 %v2975_v11  ;;  %v2989_v21 = vld [vmem:[#allocation5 + $0xa4] ss:$16 sps:$4 sm:$0xff]   ;;  %v2993_v23 = vld [vmem:[#allocation5 + $0xa0] ss:$16 sps:$4 sm:$0xff]  }
  0x45   :  { %1723 = vmatpush1.bf16.msra.mxu0 %v2976_v12  ;;  %1681 = vmatprep.subr.bf16.mxu1 %v2977_v13  ;;  %v2991_v22 = vld [vmem:[#allocation5 + $0x2a4] ss:$16 sps:$4 sm:$0xff]   ;;  %v2994_v24 = vld [vmem:[#allocation5 + $0x2a0] ss:$16 sps:$4 sm:$0xff]   ;;  %v3058_v12 = vld [vmem:[#allocation5 + $0x8] ss:$16 sps:$4 sm:$0xff]  }
  0x46   :  { %1724 = vmatprep.subr.bf16.mxu0 %v2979_v14  ;;  %v2995_v25 = vld [vmem:[#allocation5 + $0xc4] ss:$16 sps:$4 sm:$0xff]   ;;  %v2999_v27 = vld [vmem:[#allocation5 + $0xc0] ss:$16 sps:$4 sm:$0xff]   ;;  %v3066_v14 = vld [vmem:[#allocation5 + $0x2c] ss:$16 sps:$4 sm:$0xff]  }
  0x47   :  { %v2997_v26 = vld [vmem:[#allocation5 + $0x2c4] ss:$16 sps:$4 sm:$0xff]   ;;  %v3000_v28 = vld [vmem:[#allocation5 + $0x2c0] ss:$16 sps:$4 sm:$0xff]  }
  0x48   :  { %1682 = vmatpush1.bf16.msra.mxu1 %v2981_v15  ;;  %v3001_v29 = vld [vmem:[#allocation5 + $0xe4] ss:$16 sps:$4 sm:$0xff]   ;;  %v3005_v31 = vld [vmem:[#allocation5 + $0xe0] ss:$16 sps:$4 sm:$0xff]  }
  0x49   :  { %1725 = vmatpush1.bf16.msra.mxu0 %v2982_v16  ;;  %1683 = vmatprep.subr.bf16.mxu1 %v2983_v17  ;;  %v3003_v30 = vld [vmem:[#allocation5 + $0x2e4] ss:$16 sps:$4 sm:$0xff]   ;;  %v3006_v32 = vld [vmem:[#allocation5 + $0x2e0] ss:$16 sps:$4 sm:$0xff]   ;;  %v3064_v16 = vld [vmem:[#allocation5 + $0x28] ss:$16 sps:$4 sm:$0xff]  }
  0x4a   :  { %1726 = vmatprep.subr.bf16.mxu0 %v2985_v18  ;;  %v3007_v33 = vld [vmem:[#allocation5 + $0x104] ss:$16 sps:$4 sm:$0xff]   ;;  %v3011_v35 = vld [vmem:[#allocation5 + $0x100] ss:$16 sps:$4 sm:$0xff]   ;;  %v3072_v18 = vld [vmem:[#allocation5 + $0x4c] ss:$16 sps:$4 sm:$0xff]  }
  0x4b   :  { %v3009_v34 = vld [vmem:[#allocation5 + $0x304] ss:$16 sps:$4 sm:$0xff]   ;;  %v3012_v36 = vld [vmem:[#allocation5 + $0x300] ss:$16 sps:$4 sm:$0xff]  }
  0x4c   :  { %1684 = vmatpush1.bf16.msra.mxu1 %v2987_v19  ;;  %v3013_v37 = vld [vmem:[#allocation5 + $0x124] ss:$16 sps:$4 sm:$0xff]   ;;  %v3017_v39 = vld [vmem:[#allocation5 + $0x120] ss:$16 sps:$4 sm:$0xff]  }
  0x4d   :  { %1727 = vmatpush1.bf16.msra.mxu0 %v2988_v20  ;;  %1685 = vmatprep.subr.bf16.mxu1 %v2989_v21  ;;  %v3015_v38 = vld [vmem:[#allocation5 + $0x324] ss:$16 sps:$4 sm:$0xff]   ;;  %v3018_v40 = vld [vmem:[#allocation5 + $0x320] ss:$16 sps:$4 sm:$0xff]   ;;  %v3070_v20 = vld [vmem:[#allocation5 + $0x48] ss:$16 sps:$4 sm:$0xff]  }
  0x4e   :  { %1728 = vmatprep.subr.bf16.mxu0 %v2991_v22  ;;  %v3019_v41 = vld [vmem:[#allocation5 + $0x144] ss:$16 sps:$4 sm:$0xff]   ;;  %v3023_v43 = vld [vmem:[#allocation5 + $0x140] ss:$16 sps:$4 sm:$0xff]   ;;  %v3078_v22 = vld [vmem:[#allocation5 + $0x6c] ss:$16 sps:$4 sm:$0xff]  }
  0x4f   :  { %v3021_v42 = vld [vmem:[#allocation5 + $0x344] ss:$16 sps:$4 sm:$0xff]   ;;  %v3024_v44 = vld [vmem:[#allocation5 + $0x340] ss:$16 sps:$4 sm:$0xff]  }
  0x50   :  { %1686 = vmatpush1.bf16.msra.mxu1 %v2993_v23  ;;  %v3025_v45 = vld [vmem:[#allocation5 + $0x164] ss:$16 sps:$4 sm:$0xff]   ;;  %v3029_v47 = vld [vmem:[#allocation5 + $0x160] ss:$16 sps:$4 sm:$0xff]  }
  0x51   :  { %1729 = vmatpush1.bf16.msra.mxu0 %v2994_v24  ;;  %1687 = vmatprep.subr.bf16.mxu1 %v2995_v25  ;;  %v3027_v46 = vld [vmem:[#allocation5 + $0x364] ss:$16 sps:$4 sm:$0xff]   ;;  %v3030_v48 = vld [vmem:[#allocation5 + $0x360] ss:$16 sps:$4 sm:$0xff]   ;;  %v3076_v24 = vld [vmem:[#allocation5 + $0x68] ss:$16 sps:$4 sm:$0xff]  }
  0x52   :  { %1730 = vmatprep.subr.bf16.mxu0 %v2997_v26  ;;  %v69_v49 = vld [vmem:[#allocation3] sm:$0xff]  ;;  %v3084_v26 = vld [vmem:[#allocation5 + $0x8c] ss:$16 sps:$4 sm:$0xff]  }
  0x53   :  { %v73_v50 = vld [vmem:[#allocation3 + $0x20] sm:$0xff] }
  0x54   :  { %1688 = vmatpush1.bf16.msra.mxu1 %v2999_v27  ;;  %v3031_v53 = vld [vmem:[#allocation5 + $0x184] ss:$16 sps:$4 sm:$0xff]   ;;  %v2582_v54 = vcombine.high %v69_v49, %v73_v50  ;;  %v3035_v57 = vld [vmem:[#allocation5 + $0x180] ss:$16 sps:$4 sm:$0xff]   ;;  %v3600_v9 = vcombine.low %v69_v49, %v73_v50  ;;  %v3114_v49 = vld [vmem:[#allocation5 + $0x12c] ss:$16 sps:$4 sm:$0xff]  }
  0x55   :  { %1731 = vmatpush1.bf16.msra.mxu0 %v3000_v28  ;;  %1689 = vmatprep.subr.bf16.mxu1 %v3001_v29  ;;  %v3033_v55 = vld [vmem:[#allocation5 + $0x384] ss:$16 sps:$4 sm:$0xff]   ;;  %v3036_v58 = vld [vmem:[#allocation5 + $0x380] ss:$16 sps:$4 sm:$0xff]   ;;  %v3082_v28 = vld [vmem:[#allocation5 + $0x88] ss:$16 sps:$4 sm:$0xff]  }
  0x56   :  { %1732 = vmatprep.subr.bf16.mxu0 %v3003_v30  ;;  %1707 = vmatprep.mubr.bf16.mxu1 %v2582_v54  ;;  %v3037_v59 = vld [vmem:[#allocation5 + $0x1a4] ss:$16 sps:$4 sm:$0xff]   ;;  %v3041_v61 = vld [vmem:[#allocation5 + $0x1a0] ss:$16 sps:$4 sm:$0xff]   ;;  %v3090_v30 = vld [vmem:[#allocation5 + $0xac] ss:$16 sps:$4 sm:$0xff]  }
  0x57   :  { %v3039_v60 = vld [vmem:[#allocation5 + $0x3a4] ss:$16 sps:$4 sm:$0xff]   ;;  %v3042_v62 = vld [vmem:[#allocation5 + $0x3a0] ss:$16 sps:$4 sm:$0xff]  }
  0x58   :  { %1690 = vmatpush1.bf16.msra.mxu1 %v3005_v31  ;;  %v3043_v63 = vld [vmem:[#allocation5 + $0x1c4] ss:$16 sps:$4 sm:$0xff]   ;;  %v3047_v1 = vld [vmem:[#allocation5 + $0x1c0] ss:$16 sps:$4 sm:$0xff]  }
  0x59   :  { %1733 = vmatpush1.bf16.msra.mxu0 %v3006_v32  ;;  %1691 = vmatprep.subr.bf16.mxu1 %v3007_v33  ;;  %v3045_v0 = vld [vmem:[#allocation5 + $0x3c4] ss:$16 sps:$4 sm:$0xff]   ;;  %v3048_v2 = vld [vmem:[#allocation5 + $0x3c0] ss:$16 sps:$4 sm:$0xff]   ;;  %v3088_v32 = vld [vmem:[#allocation5 + $0xa8] ss:$16 sps:$4 sm:$0xff]  }
  0x5a   :  { %1734 = vmatprep.subr.bf16.mxu0 %v3009_v34  ;;  %v3049_v3 = vld [vmem:[#allocation5 + $0x1e4] ss:$16 sps:$4 sm:$0xff]   ;;  %v3053_v5 = vld [vmem:[#allocation5 + $0x1e0] ss:$16 sps:$4 sm:$0xff]   ;;  %v3096_v34 = vld [vmem:[#allocation5 + $0xcc] ss:$16 sps:$4 sm:$0xff]  }
  0x5b   :  { %v3051_v4 = vld [vmem:[#allocation5 + $0x3e4] ss:$16 sps:$4 sm:$0xff]   ;;  %v3054_v6 = vld [vmem:[#allocation5 + $0x3e0] ss:$16 sps:$4 sm:$0xff]  }
  0x5c   :  { %1692 = vmatpush1.bf16.msra.mxu1 %v3011_v35  ;;  %v3057_v7 = vld [vmem:[#allocation5 + $0x404] ss:$16 sps:$4 sm:$0xff]   ;;  %v3055_v11 = vld [vmem:[#allocation5 + $0x400] ss:$16 sps:$4 sm:$0xff]  }
  0x5d   :  { %1735 = vmatpush1.bf16.msra.mxu0 %v3012_v36  ;;  %1693 = vmatprep.subr.bf16.mxu1 %v3013_v37  ;;  %v3063_v13 = vld [vmem:[#allocation5 + $0x424] ss:$16 sps:$4 sm:$0xff]   ;;  %v3061_v15 = vld [vmem:[#allocation5 + $0x420] ss:$16 sps:$4 sm:$0xff]  }
  0x5e   :  { %1736 = vmatprep.subr.bf16.mxu0 %v3015_v38  ;;  %v3069_v17 = vld [vmem:[#allocation5 + $0x444] ss:$16 sps:$4 sm:$0xff]   ;;  %v3067_v19 = vld [vmem:[#allocation5 + $0x440] ss:$16 sps:$4 sm:$0xff]   ;;  %v3094_v38 = vld [vmem:[#allocation5 + $0xc8] ss:$16 sps:$4 sm:$0xff]  }
  0x5f   :  { %v3075_v21 = vld [vmem:[#allocation5 + $0x464] ss:$16 sps:$4 sm:$0xff]   ;;  %v3073_v23 = vld [vmem:[#allocation5 + $0x460] ss:$16 sps:$4 sm:$0xff]  }
  0x60   :  { %1694 = vmatpush1.bf16.msra.mxu1 %v3017_v39  ;;  %v3081_v25 = vld [vmem:[#allocation5 + $0x484] ss:$16 sps:$4 sm:$0xff]   ;;  %v3079_v27 = vld [vmem:[#allocation5 + $0x480] ss:$16 sps:$4 sm:$0xff]  }
  0x61   :  { %1737 = vmatpush1.bf16.msra.mxu0 %v3018_v40  ;;  %1695 = vmatprep.subr.bf16.mxu1 %v3019_v41  ;;  %v3087_v29 = vld [vmem:[#allocation5 + $0x4a4] ss:$16 sps:$4 sm:$0xff]   ;;  %v3085_v31 = vld [vmem:[#allocation5 + $0x4a0] ss:$16 sps:$4 sm:$0xff]   ;;  %v3102_v41 = vld [vmem:[#allocation5 + $0xec] ss:$16 sps:$4 sm:$0xff]  }
  0x62   :  { %1738 = vmatprep.subr.bf16.mxu0 %v3021_v42  ;;  %v3093_v33 = vld [vmem:[#allocation5 + $0x4c4] ss:$16 sps:$4 sm:$0xff]   ;;  %v3091_v37 = vld [vmem:[#allocation5 + $0x4c0] ss:$16 sps:$4 sm:$0xff]  }
  0x63   :  { %v3606_v35 = vld [vmem:[#allocation3 + $0x10] sm:$0xff] }
  0x64   :  { %1696 = vmatpush1.bf16.msra.mxu1 %v3023_v43  ;;  %v3608_v36 = vld [vmem:[#allocation3 + $0x30] sm:$0xff]  ;;  %v3100_v43 = vld [vmem:[#allocation5 + $0xe8] ss:$16 sps:$4 sm:$0xff]  }
  0x65   :  { %1739 = vmatpush1.bf16.msra.mxu0 %v3024_v44  ;;  %1697 = vmatprep.subr.bf16.mxu1 %v3025_v45  ;;  %v3612_v39 = vcombine.high %v3606_v35, %v3608_v36  ;;  %v3099_v40 = vld [vmem:[#allocation5 + $0x4e4] ss:$16 sps:$4 sm:$0xff]   ;;  %v3097_v42 = vld [vmem:[#allocation5 + $0x4e0] ss:$16 sps:$4 sm:$0xff]   ;;  %v3108_v45 = vld [vmem:[#allocation5 + $0x10c] ss:$16 sps:$4 sm:$0xff]  }
  0x66   :  { %1740 = vmatprep.subr.bf16.mxu0 %v3027_v46  ;;  %v3105_v44 = vld [vmem:[#allocation5 + $0x504] ss:$16 sps:$4 sm:$0xff]   ;;  %v3103_v46 = vld [vmem:[#allocation5 + $0x500] ss:$16 sps:$4 sm:$0xff]  }
  0x67   :  { %v3109_v50 = vld [vmem:[#allocation5 + $0x520] ss:$16 sps:$4 sm:$0xff]   ;;  %v3117_v52 = vld [vmem:[#allocation5 + $0x544] ss:$16 sps:$4 sm:$0xff]  }
  0x68   :  { %1698 = vmatpush1.bf16.msra.mxu1 %v3029_v47  ;;  %v3106_v47 = vld [vmem:[#allocation5 + $0x108] ss:$16 sps:$4 sm:$0xff]  }
  0x69   :  { %1741 = vmatpush1.bf16.msra.mxu0 %v3030_v48  ;;  %1699 = vmatprep.subr.bf16.mxu1 %v3031_v53  ;;  %v3111_v48 = vld [vmem:[#allocation5 + $0x524] ss:$16 sps:$4 sm:$0xff]   ;;  %v3120_v53 = vld [vmem:[#allocation5 + $0x14c] ss:$16 sps:$4 sm:$0xff]  }
  0x6a   :  { %1742 = vmatprep.subr.bf16.mxu0 %v3033_v55  ;;  %v3118_v55 = vld [vmem:[#allocation5 + $0x148] ss:$16 sps:$4 sm:$0xff]  }
  0x6c   :  { %1700 = vmatpush1.bf16.msra.mxu1 %v3035_v57  ;;  %v3123_v57 = vld [vmem:[#allocation5 + $0x564] ss:$16 sps:$4 sm:$0xff]  }
  0x6d   :  { %1743 = vmatpush1.bf16.msra.mxu0 %v3036_v58  ;;  %1701 = vmatprep.subr.bf16.mxu1 %v3037_v59  ;;  %v3126_v58 = vld [vmem:[#allocation5 + $0x16c] ss:$16 sps:$4 sm:$0xff]   ;;  %v3121_v59 = vld [vmem:[#allocation5 + $0x560] ss:$16 sps:$4 sm:$0xff]  }
  0x6e   :  { %1744 = vmatprep.subr.bf16.mxu0 %v3039_v60  ;;  %v3124_v60 = vld [vmem:[#allocation5 + $0x168] ss:$16 sps:$4 sm:$0xff]  }
  0x70   :  { %1702 = vmatpush1.bf16.msra.mxu1 %v3041_v61  ;;  %v3129_v61 = vld [vmem:[#allocation5 + $0x584] ss:$16 sps:$4 sm:$0xff]  }
  0x71   :  { %1745 = vmatpush1.bf16.msra.mxu0 %v3042_v62  ;;  %1703 = vmatprep.subr.bf16.mxu1 %v3043_v63  ;;  %v3132_v62 = vld [vmem:[#allocation5 + $0x18c] ss:$16 sps:$4 sm:$0xff]   ;;  %v3127_v63 = vld [vmem:[#allocation5 + $0x580] ss:$16 sps:$4 sm:$0xff]  }
  0x72   :  { %1746 = vmatprep.subr.bf16.mxu0 %v3045_v0  ;;  %v3130_v0 = vld [vmem:[#allocation5 + $0x188] ss:$16 sps:$4 sm:$0xff]  }
  0x74   :  { %1704 = vmatpush1.bf16.msra.mxu1 %v3047_v1  ;;  %v3135_v1 = vld [vmem:[#allocation5 + $0x5a4] ss:$16 sps:$4 sm:$0xff]  }
  0x75   :  { %1747 = vmatpush1.bf16.msra.mxu0 %v3048_v2  ;;  %1705 = vmatprep.subr.bf16.mxu1 %v3049_v3  ;;  %v3138_v2 = vld [vmem:[#allocation5 + $0x1ac] ss:$16 sps:$4 sm:$0xff]   ;;  %v3133_v3 = vld [vmem:[#allocation5 + $0x5a0] ss:$16 sps:$4 sm:$0xff]  }
  0x76   :  { %1748 = vmatprep.subr.bf16.mxu0 %v3051_v4  ;;  %v3136_v4 = vld [vmem:[#allocation5 + $0x1a8] ss:$16 sps:$4 sm:$0xff]  }
  0x78   :  { %1706 = vmatpush1.bf16.msra.mxu1 %v3053_v5  ;;  %v3141_v5 = vld [vmem:[#allocation5 + $0x5c4] ss:$16 sps:$4 sm:$0xff]  }
  0x79   :  { %1749 = vmatpush1.bf16.msra.mxu0 %v3054_v6  ;;  %1847 = vmatprep.subr.bf16.mxu1 %v3060_v8  ;;  %v3144_v6 = vld [vmem:[#allocation5 + $0x1cc] ss:$16 sps:$4 sm:$0xff]   ;;  %v3142_v8 = vld [vmem:[#allocation5 + $0x1c8] ss:$16 sps:$4 sm:$0xff]  }
  0x7a   :  { %1761 = vmatprep.subr.bf16.mxu0 %v3057_v7  ;;  %v3139_v7 = vld [vmem:[#allocation5 + $0x5c0] ss:$16 sps:$4 sm:$0xff]  }
  0x7b   :  { %1708 = vmatmul.mubr.bf16.vlgmr.msra.gmra.mrb[0].mxu1 %v3600_v9 }
  0x7c   :  { %1751 = vmatmul.mubr.bf16.vlgmr.msra.gmra.mrb[0].mxu0 %v3602_v10  ;;  %1848 = vmatpush1.bf16.msra.mxu1 %v3058_v12  ;;  %v3150_v12 = vld [vmem:[#allocation5 + $0x1ec] ss:$16 sps:$4 sm:$0xff]  }
  0x7d   :  { %1762 = vmatpush1.bf16.msra.mxu0 %v3055_v11  ;;  %1849 = vmatprep.subr.bf16.mxu1 %v3066_v14  ;;  %v3147_v11 = vld [vmem:[#allocation5 + $0x5e4] ss:$16 sps:$4 sm:$0xff]   ;;  %v3148_v14 = vld [vmem:[#allocation5 + $0x1e8] ss:$16 sps:$4 sm:$0xff]  }
  0x7e   :  { %1763 = vmatprep.subr.bf16.mxu0 %v3063_v13  ;;  %1879 = vmatprep.mubr.bf16.mxu1 %v2582_v54  ;;  %v3115_v54 = vld [vmem:[#allocation5 + $0x540] ss:$16 sps:$4 sm:$0xff]  }
  0x7f   :  { %1793 = vmatprep.mubr.bf16.mxu0 %v3612_v39  ;;  %v3145_v13 = vld [vmem:[#allocation5 + $0x5e0] ss:$16 sps:$4 sm:$0xff]  }
  0x80   :  { %1850 = vmatpush1.bf16.msra.mxu1 %v3064_v16  ;;  %v3156_v16 = vld [vmem:[#allocation5 + $0x20c] ss:$16 sps:$4 sm:$0xff]  }
  0x81   :  { %1764 = vmatpush1.bf16.msra.mxu0 %v3061_v15  ;;  %1851 = vmatprep.subr.bf16.mxu1 %v3072_v18  ;;  %v3153_v15 = vld [vmem:[#allocation5 + $0x604] ss:$16 sps:$4 sm:$0xff]   ;;  %v3151_v18 = vld [vmem:[#allocation5 + $0x600] ss:$16 sps:$4 sm:$0xff]  }
  0x82   :  { %1765 = vmatprep.subr.bf16.mxu0 %v3069_v17  ;;  %v3617_v17 = vcombine.low %v3606_v35, %v3608_v36  ;;  %v3180_v35 = vld [vmem:[#allocation5 + $0x28c] ss:$16 sps:$4 sm:$0xff]   ;;  %v3175_v36 = vld [vmem:[#allocation5 + $0x680] ss:$16 sps:$4 sm:$0xff]  }
  0x84   :  { %1852 = vmatpush1.bf16.msra.mxu1 %v3070_v20  ;;  %v3159_v20 = vld [vmem:[#allocation5 + $0x624] ss:$16 sps:$4 sm:$0xff]  }
  0x85   :  { %1766 = vmatpush1.bf16.msra.mxu0 %v3067_v19  ;;  %1853 = vmatprep.subr.bf16.mxu1 %v3078_v22  ;;  %v3154_v19 = vld [vmem:[#allocation5 + $0x208] ss:$16 sps:$4 sm:$0xff]  }
  0x86   :  { %1767 = vmatprep.subr.bf16.mxu0 %v3075_v21  ;;  %v3162_v21 = vld [vmem:[#allocation5 + $0x22c] ss:$16 sps:$4 sm:$0xff]  }
  0x87   :  { %v3619_v22 = vld [vmem:[#allocation3 + $0x18] sm:$0xff] }
  0x88   :  { %1854 = vmatpush1.bf16.msra.mxu1 %v3076_v24  ;;  %v3157_v24 = vld [vmem:[#allocation5 + $0x620] ss:$16 sps:$4 sm:$0xff]  }
  0x89   :  { %1768 = vmatpush1.bf16.msra.mxu0 %v3073_v23  ;;  %1855 = vmatprep.subr.bf16.mxu1 %v3084_v26  ;;  %v3621_v23 = vld [vmem:[#allocation3 + $0x38] sm:$0xff] }
  0x8a   :  { %1769 = vmatprep.subr.bf16.mxu0 %v3081_v25  ;;  %v3160_v25 = vld [vmem:[#allocation5 + $0x228] ss:$16 sps:$4 sm:$0xff]   ;;  %v3627_v26 = vcombine.high %v3619_v22, %v3621_v23 }
  0x8c   :  { %1856 = vmatpush1.bf16.msra.mxu1 %v3082_v28  ;;  %v3168_v28 = vld [vmem:[#allocation5 + $0x24c] ss:$16 sps:$4 sm:$0xff]  }
  0x8d   :  { %1770 = vmatpush1.bf16.msra.mxu0 %v3079_v27  ;;  %1857 = vmatprep.subr.bf16.mxu1 %v3090_v30  ;;  %v3165_v27 = vld [vmem:[#allocation5 + $0x644] ss:$16 sps:$4 sm:$0xff]   ;;  %v3166_v30 = vld [vmem:[#allocation5 + $0x248] ss:$16 sps:$4 sm:$0xff]  }
  0x8e   :  { %1771 = vmatprep.subr.bf16.mxu0 %v3087_v29  ;;  %v3163_v29 = vld [vmem:[#allocation5 + $0x640] ss:$16 sps:$4 sm:$0xff]  }
  0x90   :  { %1858 = vmatpush1.bf16.msra.mxu1 %v3088_v32  ;;  %v3169_v32 = vld [vmem:[#allocation5 + $0x660] ss:$16 sps:$4 sm:$0xff]  }
  0x91   :  { %1772 = vmatpush1.bf16.msra.mxu0 %v3085_v31  ;;  %1859 = vmatprep.subr.bf16.mxu1 %v3096_v34  ;;  %v3174_v31 = vld [vmem:[#allocation5 + $0x26c] ss:$16 sps:$4 sm:$0xff]   ;;  %v3177_v34 = vld [vmem:[#allocation5 + $0x684] ss:$16 sps:$4 sm:$0xff]  }
  0x92   :  { %1773 = vmatprep.subr.bf16.mxu0 %v3093_v33  ;;  %v3172_v33 = vld [vmem:[#allocation5 + $0x268] ss:$16 sps:$4 sm:$0xff]  }
  0x94   :  { %1860 = vmatpush1.bf16.msra.mxu1 %v3094_v38  ;;  %v3186_v38 = vld [vmem:[#allocation5 + $0x2ac] ss:$16 sps:$4 sm:$0xff]  }
  0x95   :  { %1774 = vmatpush1.bf16.msra.mxu0 %v3091_v37  ;;  %1861 = vmatprep.subr.bf16.mxu1 %v3102_v41  ;;  %v3178_v37 = vld [vmem:[#allocation5 + $0x288] ss:$16 sps:$4 sm:$0xff]  }
  0x96   :  { %1775 = vmatprep.subr.bf16.mxu0 %v3099_v40  ;;  %v3181_v40 = vld [vmem:[#allocation5 + $0x6a0] ss:$16 sps:$4 sm:$0xff]   ;;  %v3184_v41 = vld [vmem:[#allocation5 + $0x2a8] ss:$16 sps:$4 sm:$0xff]  }
  0x98   :  { %1862 = vmatpush1.bf16.msra.mxu1 %v3100_v43  ;;  %v3192_v43 = vld [vmem:[#allocation5 + $0x2cc] ss:$16 sps:$4 sm:$0xff]  }
  0x99   :  { %1776 = vmatpush1.bf16.msra.mxu0 %v3097_v42  ;;  %1863 = vmatprep.subr.bf16.mxu1 %v3108_v45  ;;  %v3189_v42 = vld [vmem:[#allocation5 + $0x6c4] ss:$16 sps:$4 sm:$0xff]   ;;  %v3190_v45 = vld [vmem:[#allocation5 + $0x2c8] ss:$16 sps:$4 sm:$0xff]  }
  0x9a   :  { %1777 = vmatprep.subr.bf16.mxu0 %v3105_v44  ;;  %v3187_v44 = vld [vmem:[#allocation5 + $0x6c0] ss:$16 sps:$4 sm:$0xff]  }
  0x9c   :  { %1864 = vmatpush1.bf16.msra.mxu1 %v3106_v47  ;;  %v3198_v47 = vld [vmem:[#allocation5 + $0x2ec] ss:$16 sps:$4 sm:$0xff]  }
  0x9d   :  { %1778 = vmatpush1.bf16.msra.mxu0 %v3103_v46  ;;  %1865 = vmatprep.subr.bf16.mxu1 %v3114_v49  ;;  %v3195_v46 = vld [vmem:[#allocation5 + $0x6e4] ss:$16 sps:$4 sm:$0xff]   ;;  %v3196_v49 = vld [vmem:[#allocation5 + $0x2e8] ss:$16 sps:$4 sm:$0xff]  }
  0x9e   :  { %1779 = vmatprep.subr.bf16.mxu0 %v3111_v48  ;;  %v3193_v48 = vld [vmem:[#allocation5 + $0x6e0] ss:$16 sps:$4 sm:$0xff]  }
  0xa0   :  { %1866 = vmatpush1.bf16.msra.mxu1 %v3112_v51  ;;  %v3204_v51 = vld [vmem:[#allocation5 + $0x30c] ss:$16 sps:$4 sm:$0xff]  }
  0xa1   :  { %1780 = vmatpush1.bf16.msra.mxu0 %v3109_v50  ;;  %1867 = vmatprep.subr.bf16.mxu1 %v3120_v53  ;;  %v3201_v50 = vld [vmem:[#allocation5 + $0x704] ss:$16 sps:$4 sm:$0xff]   ;;  %v3202_v53 = vld [vmem:[#allocation5 + $0x308] ss:$16 sps:$4 sm:$0xff]  }
  0xa2   :  { %1781 = vmatprep.subr.bf16.mxu0 %v3117_v52  ;;  %v3199_v52 = vld [vmem:[#allocation5 + $0x700] ss:$16 sps:$4 sm:$0xff]  }
  0xa4   :  { %1868 = vmatpush1.bf16.msra.mxu1 %v3118_v55  ;;  %v3210_v55 = vld [vmem:[#allocation5 + $0x32c] ss:$16 sps:$4 sm:$0xff]  }
  0xa5   :  { %1782 = vmatpush1.bf16.msra.mxu0 %v3115_v54  ;;  %1869 = vmatprep.subr.bf16.mxu1 %v3126_v58  ;;  %v3207_v54 = vld [vmem:[#allocation5 + $0x724] ss:$16 sps:$4 sm:$0xff]   ;;  %v3208_v58 = vld [vmem:[#allocation5 + $0x328] ss:$16 sps:$4 sm:$0xff]  }
  0xa6   :  { %1783 = vmatprep.subr.bf16.mxu0 %v3123_v57  ;;  %v3205_v57 = vld [vmem:[#allocation5 + $0x720] ss:$16 sps:$4 sm:$0xff]  }
  0xa8   :  { %1870 = vmatpush1.bf16.msra.mxu1 %v3124_v60  ;;  %v3216_v60 = vld [vmem:[#allocation5 + $0x34c] ss:$16 sps:$4 sm:$0xff]  }
  0xa9   :  { %1784 = vmatpush1.bf16.msra.mxu0 %v3121_v59  ;;  %1871 = vmatprep.subr.bf16.mxu1 %v3132_v62  ;;  %v3213_v59 = vld [vmem:[#allocation5 + $0x744] ss:$16 sps:$4 sm:$0xff]   ;;  %v3214_v62 = vld [vmem:[#allocation5 + $0x348] ss:$16 sps:$4 sm:$0xff]  }
  0xaa   :  { %1785 = vmatprep.subr.bf16.mxu0 %v3129_v61  ;;  %v3211_v61 = vld [vmem:[#allocation5 + $0x740] ss:$16 sps:$4 sm:$0xff]  }
  0xac   :  { %1872 = vmatpush1.bf16.msra.mxu1 %v3130_v0  ;;  %v3222_v0 = vld [vmem:[#allocation5 + $0x36c] ss:$16 sps:$4 sm:$0xff]  }
  0xad   :  { %1786 = vmatpush1.bf16.msra.mxu0 %v3127_v63  ;;  %1873 = vmatprep.subr.bf16.mxu1 %v3138_v2  ;;  %v3219_v63 = vld [vmem:[#allocation5 + $0x764] ss:$16 sps:$4 sm:$0xff]   ;;  %v3220_v2 = vld [vmem:[#allocation5 + $0x368] ss:$16 sps:$4 sm:$0xff]  }
  0xae   :  { %1787 = vmatprep.subr.bf16.mxu0 %v3135_v1  ;;  %v3217_v1 = vld [vmem:[#allocation5 + $0x760] ss:$16 sps:$4 sm:$0xff]  }
  0xb0   :  { %1874 = vmatpush1.bf16.msra.mxu1 %v3136_v4  ;;  %v3228_v4 = vld [vmem:[#allocation5 + $0x38c] ss:$16 sps:$4 sm:$0xff]  }
  0xb1   :  { %1788 = vmatpush1.bf16.msra.mxu0 %v3133_v3  ;;  %1875 = vmatprep.subr.bf16.mxu1 %v3144_v6  ;;  %v3225_v3 = vld [vmem:[#allocation5 + $0x784] ss:$16 sps:$4 sm:$0xff]   ;;  %v3226_v6 = vld [vmem:[#allocation5 + $0x388] ss:$16 sps:$4 sm:$0xff]  }
  0xb2   :  { %1789 = vmatprep.subr.bf16.mxu0 %v3141_v5  ;;  %v3223_v5 = vld [vmem:[#allocation5 + $0x780] ss:$16 sps:$4 sm:$0xff]  }
  0xb4   :  { %1876 = vmatpush1.bf16.msra.mxu1 %v3142_v8  ;;  %v3234_v8 = vld [vmem:[#allocation5 + $0x3ac] ss:$16 sps:$4 sm:$0xff]  }
  0xb5   :  { %1790 = vmatpush1.bf16.msra.mxu0 %v3139_v7  ;;  %1877 = vmatprep.subr.bf16.mxu1 %v3150_v12  ;;  %v3231_v7 = vld [vmem:[#allocation5 + $0x7a4] ss:$16 sps:$4 sm:$0xff]   ;;  %v3232_v12 = vld [vmem:[#allocation5 + $0x3a8] ss:$16 sps:$4 sm:$0xff]  }
  0xb6   :  { %1791 = vmatprep.subr.bf16.mxu0 %v3147_v11  ;;  %v3229_v11 = vld [vmem:[#allocation5 + $0x7a0] ss:$16 sps:$4 sm:$0xff]  }
  0xb8   :  { %1878 = vmatpush1.bf16.msra.mxu1 %v3148_v14  ;;  %v3240_v14 = vld [vmem:[#allocation5 + $0x3cc] ss:$16 sps:$4 sm:$0xff]  }
  0xb9   :  { %1792 = vmatpush1.bf16.msra.mxu0 %v3145_v13  ;;  %1890 = vmatprep.subr.bf16.mxu1 %v3156_v16  ;;  %v3237_v13 = vld [vmem:[#allocation5 + $0x7c4] ss:$16 sps:$4 sm:$0xff]   ;;  %v3238_v16 = vld [vmem:[#allocation5 + $0x3c8] ss:$16 sps:$4 sm:$0xff]  }
  0xba   :  { %1804 = vmatprep.subr.bf16.mxu0 %v3153_v15  ;;  %v3235_v15 = vld [vmem:[#allocation5 + $0x7c0] ss:$16 sps:$4 sm:$0xff]  }
  0xbb   :  { %1880 = vmatmul.mubr.bf16.vlgmr.msra.gmra.mrb[4].mxu1 %v3600_v9  ;;  %v3171_v9 = vld [vmem:[#allocation5 + $0x664] ss:$16 sps:$4 sm:$0xff]  }
  0xbc   :  { %1794 = vmatmul.mubr.bf16.vlgmr.msra.gmra.mrb[0].mxu0 %v3617_v17  ;;  %1891 = vmatpush1.bf16.msra.mxu1 %v3154_v19  ;;  %v3246_v19 = vld [vmem:[#allocation5 + $0x3ec] ss:$16 sps:$4 sm:$0xff]  }
  0xbd   :  { %1805 = vmatpush1.bf16.msra.mxu0 %v3151_v18  ;;  %1892 = vmatprep.subr.bf16.mxu1 %v3162_v21  ;;  %v3243_v18 = vld [vmem:[#allocation5 + $0x7e4] ss:$16 sps:$4 sm:$0xff]   ;;  %v3244_v21 = vld [vmem:[#allocation5 + $0x3e8] ss:$16 sps:$4 sm:$0xff]  }
  0xbe   :  { %1806 = vmatprep.subr.bf16.mxu0 %v3159_v20  ;;  %1836 = vmatprep.mubr.bf16.mxu0 %v3627_v26  ;;  %v3241_v20 = vld [vmem:[#allocation5 + $0x7e0] ss:$16 sps:$4 sm:$0xff]  }
  0xbf   :  { %1922 = vmatprep.mubr.bf16.mxu1 %v3597_v56  ;;  %v3183_v56 = vld [vmem:[#allocation5 + $0x6a4] ss:$16 sps:$4 sm:$0xff]  }
  0xc0   :  { %1893 = vmatpush1.bf16.msra.mxu1 %v3160_v25  ;;  %v3247_v25 = vld [vmem:[#allocation5 + $0x408] ss:$16 sps:$4 sm:$0xff]  }
  0xc1   :  { %1807 = vmatpush1.bf16.msra.mxu0 %v3157_v24  ;;  %1894 = vmatprep.subr.bf16.mxu1 %v3168_v28  ;;  %v3249_v24 = vld [vmem:[#allocation5 + $0x40c] ss:$16 sps:$4 sm:$0xff]  }
  0xc2   :  { %1808 = vmatprep.subr.bf16.mxu0 %v3165_v27  ;;  %v3633_v27 = vcombine.low %v3619_v22, %v3621_v23  ;;  %v3252_v28 = vld [vmem:[#allocation5 + $0x42c] ss:$16 sps:$4 sm:$0xff]   ;;  %v3346_v22 = vld [vmem:[#allocation7 + $0x10] ss:$8 sps:$4 sm:$0xff]  }
  0xc3   :  { %v3351_v23 = vld [vmem:[#allocation7 + $0x24] ss:$8 sps:$4 sm:$0xff]  }
  0xc4   :  { %1895 = vmatpush1.bf16.msra.mxu1 %v3166_v30  ;;  %v3345_v30 = vld [vmem:[#allocation7 + $0x4] ss:$8 sps:$4 sm:$0xff]  }
  0xc5   :  { %1809 = vmatpush1.bf16.msra.mxu0 %v3163_v29  ;;  %1896 = vmatprep.subr.bf16.mxu1 %v3174_v31  ;;  %v3343_v29 = vld [vmem:[#allocation7] ss:$8 sps:$4 sm:$0xff]   ;;  %v3348_v31 = vld [vmem:[#allocation7 + $0x14] ss:$8 sps:$4 sm:$0xff]  }
  0xc6   :  { %1810 = vmatprep.subr.bf16.mxu0 %v3171_v9  ;;  %v3250_v9 = vld [vmem:[#allocation5 + $0x428] ss:$16 sps:$4 sm:$0xff]  }
  0xc8   :  { %1897 = vmatpush1.bf16.msra.mxu1 %v3172_v33  ;;  %v3253_v33 = vld [vmem:[#allocation5 + $0x448] ss:$16 sps:$4 sm:$0xff]  }
  0xc9   :  { %1811 = vmatpush1.bf16.msra.mxu0 %v3169_v32  ;;  %1898 = vmatprep.subr.bf16.mxu1 %v3180_v35  ;;  %v3255_v32 = vld [vmem:[#allocation5 + $0x44c] ss:$16 sps:$4 sm:$0xff]  }
  0xca   :  { %1812 = vmatprep.subr.bf16.mxu0 %v3177_v34  ;;  %v3258_v34 = vld [vmem:[#allocation5 + $0x46c] ss:$16 sps:$4 sm:$0xff]  }
  0xcb   :  { %v3354_v35 = vld [vmem:[#allocation7 + $0x34] ss:$8 sps:$4 sm:$0xff]  }
  0xcc   :  { %1899 = vmatpush1.bf16.msra.mxu1 %v3178_v37  ;;  %v3352_v37 = vld [vmem:[#allocation7 + $0x30] ss:$8 sps:$4 sm:$0xff]  }
  0xcd   :  { %1813 = vmatpush1.bf16.msra.mxu0 %v3175_v36  ;;  %1900 = vmatprep.subr.bf16.mxu1 %v3186_v38  ;;  %v3256_v36 = vld [vmem:[#allocation5 + $0x468] ss:$16 sps:$4 sm:$0xff]  }
  0xce   :  { %1814 = vmatprep.subr.bf16.mxu0 %v3183_v56  ;;  %v3357_v56 = vld [vmem:[#allocation7 + $0x44] ss:$8 sps:$4 sm:$0xff]   ;;  %v3259_v38 = vld [vmem:[#allocation5 + $0x488] ss:$16 sps:$4 sm:$0xff]  }
  0xd0   :  { %1901 = vmatpush1.bf16.msra.mxu1 %v3184_v41  ;;  %v3355_v41 = vld [vmem:[#allocation7 + $0x40] ss:$8 sps:$4 sm:$0xff]  }
  0xd1   :  { %1815 = vmatpush1.bf16.msra.mxu0 %v3181_v40  ;;  %1902 = vmatprep.subr.bf16.mxu1 %v3192_v43  ;;  %v3264_v40 = vld [vmem:[#allocation5 + $0x4ac] ss:$16 sps:$4 sm:$0xff]   ;;  %v3262_v43 = vld [vmem:[#allocation5 + $0x4a8] ss:$16 sps:$4 sm:$0xff]  }
  0xd2   :  { %1816 = vmatprep.subr.bf16.mxu0 %v3189_v42  ;;  %v3360_v42 = vld [vmem:[#allocation7 + $0x54] ss:$8 sps:$4 sm:$0xff]  }
  0xd4   :  { %1903 = vmatpush1.bf16.msra.mxu1 %v3190_v45  ;;  %v3358_v45 = vld [vmem:[#allocation7 + $0x50] ss:$8 sps:$4 sm:$0xff]  }
  0xd5   :  { %1817 = vmatpush1.bf16.msra.mxu0 %v3187_v44  ;;  %1904 = vmatprep.subr.bf16.mxu1 %v3198_v47  ;;  %v3267_v44 = vld [vmem:[#allocation5 + $0x4cc] ss:$16 sps:$4 sm:$0xff]   ;;  %v3265_v47 = vld [vmem:[#allocation5 + $0x4c8] ss:$16 sps:$4 sm:$0xff]  }
  0xd6   :  { %1818 = vmatprep.subr.bf16.mxu0 %v3195_v46  ;;  %v3363_v46 = vld [vmem:[#allocation7 + $0x64] ss:$8 sps:$4 sm:$0xff]  }
  0xd8   :  { %1905 = vmatpush1.bf16.msra.mxu1 %v3196_v49  ;;  %v3361_v49 = vld [vmem:[#allocation7 + $0x60] ss:$8 sps:$4 sm:$0xff]  }
  0xd9   :  { %1819 = vmatpush1.bf16.msra.mxu0 %v3193_v48  ;;  %1906 = vmatprep.subr.bf16.mxu1 %v3204_v51  ;;  %v3270_v48 = vld [vmem:[#allocation5 + $0x4ec] ss:$16 sps:$4 sm:$0xff]   ;;  %v3268_v51 = vld [vmem:[#allocation5 + $0x4e8] ss:$16 sps:$4 sm:$0xff]  }
  0xda   :  { %1820 = vmatprep.subr.bf16.mxu0 %v3201_v50  ;;  %v3366_v50 = vld [vmem:[#allocation7 + $0x74] ss:$8 sps:$4 sm:$0xff]  }
  0xdc   :  { %1907 = vmatpush1.bf16.msra.mxu1 %v3202_v53  ;;  %v3364_v53 = vld [vmem:[#allocation7 + $0x70] ss:$8 sps:$4 sm:$0xff]  }
  0xdd   :  { %1821 = vmatpush1.bf16.msra.mxu0 %v3199_v52  ;;  %1908 = vmatprep.subr.bf16.mxu1 %v3210_v55  ;;  %v3273_v52 = vld [vmem:[#allocation5 + $0x50c] ss:$16 sps:$4 sm:$0xff]   ;;  %v3271_v55 = vld [vmem:[#allocation5 + $0x508] ss:$16 sps:$4 sm:$0xff]  }
  0xde   :  { %1822 = vmatprep.subr.bf16.mxu0 %v3207_v54  ;;  %v3369_v54 = vld [vmem:[#allocation7 + $0x84] ss:$8 sps:$4 sm:$0xff]  }
  0xe0   :  { %1909 = vmatpush1.bf16.msra.mxu1 %v3208_v58  ;;  %v3367_v58 = vld [vmem:[#allocation7 + $0x80] ss:$8 sps:$4 sm:$0xff]  }
  0xe1   :  { %1823 = vmatpush1.bf16.msra.mxu0 %v3205_v57  ;;  %1910 = vmatprep.subr.bf16.mxu1 %v3216_v60  ;;  %v3276_v57 = vld [vmem:[#allocation5 + $0x52c] ss:$16 sps:$4 sm:$0xff]   ;;  %v3274_v60 = vld [vmem:[#allocation5 + $0x528] ss:$16 sps:$4 sm:$0xff]  }
  0xe2   :  { %1824 = vmatprep.subr.bf16.mxu0 %v3213_v59  ;;  %v3372_v59 = vld [vmem:[#allocation7 + $0x94] ss:$8 sps:$4 sm:$0xff]  }
  0xe4   :  { %1911 = vmatpush1.bf16.msra.mxu1 %v3214_v62  ;;  %v3370_v62 = vld [vmem:[#allocation7 + $0x90] ss:$8 sps:$4 sm:$0xff]  }
  0xe5   :  { %1825 = vmatpush1.bf16.msra.mxu0 %v3211_v61  ;;  %1912 = vmatprep.subr.bf16.mxu1 %v3222_v0  ;;  %v3279_v61 = vld [vmem:[#allocation5 + $0x54c] ss:$16 sps:$4 sm:$0xff]   ;;  %v3277_v0 = vld [vmem:[#allocation5 + $0x548] ss:$16 sps:$4 sm:$0xff]  }
  0xe6   :  { %1826 = vmatprep.subr.bf16.mxu0 %v3219_v63  ;;  %v3375_v63 = vld [vmem:[#allocation7 + $0xa4] ss:$8 sps:$4 sm:$0xff]  }
  0xe8   :  { %1913 = vmatpush1.bf16.msra.mxu1 %v3220_v2  ;;  %v3373_v2 = vld [vmem:[#allocation7 + $0xa0] ss:$8 sps:$4 sm:$0xff]  }
  0xe9   :  { %1827 = vmatpush1.bf16.msra.mxu0 %v3217_v1  ;;  %1914 = vmatprep.subr.bf16.mxu1 %v3228_v4  ;;  %v3282_v1 = vld [vmem:[#allocation5 + $0x56c] ss:$16 sps:$4 sm:$0xff]   ;;  %v3280_v4 = vld [vmem:[#allocation5 + $0x568] ss:$16 sps:$4 sm:$0xff]  }
  0xea   :  { %1828 = vmatprep.subr.bf16.mxu0 %v3225_v3  ;;  %v3378_v3 = vld [vmem:[#allocation7 + $0xb4] ss:$8 sps:$4 sm:$0xff]  }
  0xec   :  { %1915 = vmatpush1.bf16.msra.mxu1 %v3226_v6  ;;  %v3376_v6 = vld [vmem:[#allocation7 + $0xb0] ss:$8 sps:$4 sm:$0xff]  }
  0xed   :  { %1829 = vmatpush1.bf16.msra.mxu0 %v3223_v5  ;;  %1916 = vmatprep.subr.bf16.mxu1 %v3234_v8  ;;  %v3285_v5 = vld [vmem:[#allocation5 + $0x58c] ss:$16 sps:$4 sm:$0xff]   ;;  %v3283_v8 = vld [vmem:[#allocation5 + $0x588] ss:$16 sps:$4 sm:$0xff]  }
  0xee   :  { %1830 = vmatprep.subr.bf16.mxu0 %v3231_v7  ;;  %v3381_v7 = vld [vmem:[#allocation7 + $0xc4] ss:$8 sps:$4 sm:$0xff]  }
  0xf0   :  { %1917 = vmatpush1.bf16.msra.mxu1 %v3232_v12  ;;  %v3379_v12 = vld [vmem:[#allocation7 + $0xc0] ss:$8 sps:$4 sm:$0xff]  }
  0xf1   :  { %1831 = vmatpush1.bf16.msra.mxu0 %v3229_v11  ;;  %1918 = vmatprep.subr.bf16.mxu1 %v3240_v14  ;;  %v3288_v11 = vld [vmem:[#allocation5 + $0x5ac] ss:$16 sps:$4 sm:$0xff]  }
  0xf2   :  { %1832 = vmatprep.subr.bf16.mxu0 %v3237_v13  ;;  %v3286_v13 = vld [vmem:[#allocation5 + $0x5a8] ss:$16 sps:$4 sm:$0xff]   ;;  %v3291_v14 = vld [vmem:[#allocation5 + $0x5cc] ss:$16 sps:$4 sm:$0xff]  }
  0xf4   :  { %1919 = vmatpush1.bf16.msra.mxu1 %v3238_v16  ;;  %v3294_v16 = vld [vmem:[#allocation5 + $0x5ec] ss:$16 sps:$4 sm:$0xff]  }
  0xf5   :  { %1833 = vmatpush1.bf16.msra.mxu0 %v3235_v15  ;;  %1920 = vmatprep.subr.bf16.mxu1 %v3246_v19  ;;  %v3289_v15 = vld [vmem:[#allocation5 + $0x5c8] ss:$16 sps:$4 sm:$0xff]   ;;  %v3297_v19 = vld [vmem:[#allocation5 + $0x60c] ss:$16 sps:$4 sm:$0xff]  }
  0xf6   :  { %1834 = vmatprep.subr.bf16.mxu0 %v3243_v18  ;;  %v3292_v18 = vld [vmem:[#allocation5 + $0x5e8] ss:$16 sps:$4 sm:$0xff]  }
  0xf8   :  { %1921 = vmatpush1.bf16.msra.mxu1 %v3244_v21  ;;  %v3300_v21 = vld [vmem:[#allocation5 + $0x62c] ss:$16 sps:$4 sm:$0xff]  }
  0xf9   :  { %1835 = vmatpush1.bf16.msra.mxu0 %v3241_v20  ;;  %1933 = vmatprep.subr.bf16.mxu1 %v3249_v24  ;;  %v3295_v20 = vld [vmem:[#allocation5 + $0x608] ss:$16 sps:$4 sm:$0xff]  }
  0xfa   :  { %2443 = vmatprep.subr.bf16.mxu0 %v3345_v30  ;;  %v3298_v24 = vld [vmem:[#allocation5 + $0x628] ss:$16 sps:$4 sm:$0xff]  }
  0xfb   :  { %1923 = vmatmul.mubr.bf16.vlgmr.msra.gmra.mrb[4].mxu1 %v3602_v10  ;;  %v3349_v10 = vld [vmem:[#allocation7 + $0x20] ss:$8 sps:$4 sm:$0xff]  }
  0xfc   :  { %1837 = vmatmul.mubr.bf16.vlgmr.msra.gmra.mrb[0].mxu0 %v3633_v27  ;;  %1934 = vmatpush1.bf16.msra.mxu1 %v3247_v25  ;;  %v3303_v25 = vld [vmem:[#allocation5 + $0x64c] ss:$16 sps:$4 sm:$0xff]   ;;  %v3304_v30 = vld [vmem:[#allocation5 + $0x668] ss:$16 sps:$4 sm:$0xff]  }
  0xfd   :  { %1965 = vmatprep.mubr.bf16.mxu1 %v3612_v39  ;;  %1935 = vmatprep.subr.bf16.mxu1 %v3252_v28  ;;  %v3261_v39 = vld [vmem:[#allocation5 + $0x48c] ss:$16 sps:$4 sm:$0xff]   ;;  %v3301_v28 = vld [vmem:[#allocation5 + $0x648] ss:$16 sps:$4 sm:$0xff]  }
  0xfe   :  { %2444 = vmatpush1.bf16.msra.mxu0 %v3343_v29  ;;  %v3306_v29 = vld [vmem:[#allocation5 + $0x66c] ss:$16 sps:$4 sm:$0xff]  }
  0xff   :  { %2445 = vmatprep.subr.bf16.mxu0 %v3348_v31  ;;  %v3307_v31 = vld [vmem:[#allocation5 + $0x688] ss:$16 sps:$4 sm:$0xff]  }
 0x100   :  { %1936 = vmatpush1.bf16.msra.mxu1 %v3250_v9  ;;  %v3309_v9 = vld [vmem:[#allocation5 + $0x68c] ss:$16 sps:$4 sm:$0xff]  }
 0x101   :  { %1937 = vmatprep.subr.bf16.mxu1 %v3255_v32  ;;  %v3312_v32 = vld [vmem:[#allocation5 + $0x6ac] ss:$16 sps:$4 sm:$0xff]  }
 0x102   :  { %2446 = vmatpush1.bf16.msra.mxu0 %v3346_v22  ;;  %v3384_v22 = vld [vmem:[#allocation7 + $0xd4] ss:$8 sps:$4 sm:$0xff]  }
 0x103   :  { %2447 = vmatprep.subr.bf16.mxu0 %v3351_v23  ;;  %v3315_v23 = vld [vmem:[#allocation5 + $0x6cc] ss:$16 sps:$4 sm:$0xff]  }
 0x104   :  { %1938 = vmatpush1.bf16.msra.mxu1 %v3253_v33 }
 0x105   :  { %1939 = vmatprep.subr.bf16.mxu1 %v3258_v34 }
 0x106   :  { %2448 = vmatpush1.bf16.msra.mxu0 %v3349_v10 }
 0x107   :  { %2449 = vmatprep.subr.bf16.mxu0 %v3354_v35  ;;  %v3313_v35 = vld [vmem:[#allocation5 + $0x6c8] ss:$16 sps:$4 sm:$0xff]  }
 0x108   :  { %1940 = vmatpush1.bf16.msra.mxu1 %v3256_v36  ;;  %v3387_v36 = vld [vmem:[#allocation7 + $0xe4] ss:$8 sps:$4 sm:$0xff]  }
 0x109   :  { %1941 = vmatprep.subr.bf16.mxu1 %v3261_v39 }
 0x10a   :  { %2450 = vmatpush1.bf16.msra.mxu0 %v3352_v37  ;;  %v3318_v37 = vld [vmem:[#allocation5 + $0x6ec] ss:$16 sps:$4 sm:$0xff]  }
 0x10b   :  { %2451 = vmatprep.subr.bf16.mxu0 %v3357_v56  ;;  %v3385_v56 = vld [vmem:[#allocation7 + $0xe0] ss:$8 sps:$4 sm:$0xff]  }
 0x10c   :  { %1942 = vmatpush1.bf16.msra.mxu1 %v3259_v38  ;;  %v3316_v38 = vld [vmem:[#allocation5 + $0x6e8] ss:$16 sps:$4 sm:$0xff]  }
 0x10d   :  { %1943 = vmatprep.subr.bf16.mxu1 %v3264_v40  ;;  %v3390_v40 = vld [vmem:[#allocation7 + $0xf4] ss:$8 sps:$4 sm:$0xff]  }
 0x10e   :  { %2452 = vmatpush1.bf16.msra.mxu0 %v3355_v41  ;;  %v3321_v41 = vld [vmem:[#allocation5 + $0x70c] ss:$16 sps:$4 sm:$0xff]  }
 0x10f   :  { %2453 = vmatprep.subr.bf16.mxu0 %v3360_v42  ;;  %v3388_v42 = vld [vmem:[#allocation7 + $0xf0] ss:$8 sps:$4 sm:$0xff]  }
 0x110   :  { %1944 = vmatpush1.bf16.msra.mxu1 %v3262_v43  ;;  %v3319_v43 = vld [vmem:[#allocation5 + $0x708] ss:$16 sps:$4 sm:$0xff]  }
 0x111   :  { %1945 = vmatprep.subr.bf16.mxu1 %v3267_v44  ;;  %v3324_v44 = vld [vmem:[#allocation5 + $0x72c] ss:$16 sps:$4 sm:$0xff]  }
 0x112   :  { %2454 = vmatpush1.bf16.msra.mxu0 %v3358_v45  ;;  %v3393_v45 = vld [vmem:[#allocation7 + $0x104] ss:$8 sps:$4 sm:$0xff]  }
 0x113   :  { %2455 = vmatprep.subr.bf16.mxu0 %v3363_v46  ;;  %v3322_v46 = vld [vmem:[#allocation5 + $0x728] ss:$16 sps:$4 sm:$0xff]  }
 0x114   :  { %1946 = vmatpush1.bf16.msra.mxu1 %v3265_v47  ;;  %v3327_v47 = vld [vmem:[#allocation5 + $0x74c] ss:$16 sps:$4 sm:$0xff]  }
 0x115   :  { %1947 = vmatprep.subr.bf16.mxu1 %v3270_v48  ;;  %v3325_v48 = vld [vmem:[#allocation5 + $0x748] ss:$16 sps:$4 sm:$0xff]  }
 0x116   :  { %2456 = vmatpush1.bf16.msra.mxu0 %v3361_v49  ;;  %v3330_v49 = vld [vmem:[#allocation5 + $0x76c] ss:$16 sps:$4 sm:$0xff]  }
 0x117   :  { %2457 = vmatprep.subr.bf16.mxu0 %v3366_v50  ;;  %v3328_v50 = vld [vmem:[#allocation5 + $0x768] ss:$16 sps:$4 sm:$0xff]  }
 0x118   :  { %1948 = vmatpush1.bf16.msra.mxu1 %v3268_v51  ;;  %v3333_v51 = vld [vmem:[#allocation5 + $0x78c] ss:$16 sps:$4 sm:$0xff]  }
 0x119   :  { %1949 = vmatprep.subr.bf16.mxu1 %v3273_v52  ;;  %v3331_v52 = vld [vmem:[#allocation5 + $0x788] ss:$16 sps:$4 sm:$0xff]  }
 0x11a   :  { %2458 = vmatpush1.bf16.msra.mxu0 %v3364_v53  ;;  %v3336_v53 = vld [vmem:[#allocation5 + $0x7ac] ss:$16 sps:$4 sm:$0xff]  }
 0x11b   :  { %2459 = vmatprep.subr.bf16.mxu0 %v3369_v54  ;;  %v3334_v54 = vld [vmem:[#allocation5 + $0x7a8] ss:$16 sps:$4 sm:$0xff]  }
 0x11c   :  { %1950 = vmatpush1.bf16.msra.mxu1 %v3271_v55  ;;  %v3339_v55 = vld [vmem:[#allocation5 + $0x7cc] ss:$16 sps:$4 sm:$0xff]  }
 0x11d   :  { %1951 = vmatprep.subr.bf16.mxu1 %v3276_v57  ;;  %v3337_v57 = vld [vmem:[#allocation5 + $0x7c8] ss:$16 sps:$4 sm:$0xff]  }
 0x11e   :  { %2460 = vmatpush1.bf16.msra.mxu0 %v3367_v58  ;;  %v3342_v58 = vld [vmem:[#allocation5 + $0x7ec] ss:$16 sps:$4 sm:$0xff]  }
 0x11f   :  { %2461 = vmatprep.subr.bf16.mxu0 %v3372_v59  ;;  %v3340_v59 = vld [vmem:[#allocation5 + $0x7e8] ss:$16 sps:$4 sm:$0xff]  }
 0x120   :  { %1952 = vmatpush1.bf16.msra.mxu1 %v3274_v60  ;;  %v335_v60 = vlaneseq }
 0x121   :  { %1953 = vmatprep.subr.bf16.mxu1 %v3279_v61 }
 0x122   :  { %2462 = vmatpush1.bf16.msra.mxu0 %v3370_v62  ;;  %v3647_v61 = vshrl.u32 %v335_v60, 7 }
 0x123   :  { %2463 = vmatprep.subr.bf16.mxu0 %v3375_v63  ;;  %v3655_v63 = vld [vmem:[%s3689_s2] sm:$0xf] }
 0x124   :  { %1954 = vmatpush1.bf16.msra.mxu1 %v3277_v0  ;;  %v3650_v62 = vsub.s32 0, %v3647_v61  ;;  %v3658_v0 = vsub.s32 1, %v3647_v61 }
 0x125   :  { %1955 = vmatprep.subr.bf16.mxu1 %v3282_v1 }
 0x126   :  { %2464 = vmatpush1.bf16.msra.mxu0 %v3373_v2  ;;  %v338_v1 = vrot.slane %v3655_v63, %v3650_v62 }
 0x127   :  { %2465 = vmatprep.subr.bf16.mxu0 %v3378_v3 }
 0x128   :  { %1956 = vmatpush1.bf16.msra.mxu1 %v3280_v4 }
 0x129   :  { %1957 = vmatprep.subr.bf16.mxu1 %v3285_v5 }
 0x12a   :  { %2466 = vmatpush1.bf16.msra.mxu0 %v3376_v6 }
 0x12b   :  { %2467 = vmatprep.subr.bf16.mxu0 %v3381_v7 }
 0x12c   :  { %1958 = vmatpush1.bf16.msra.mxu1 %v3283_v8 }
 0x12d   :  { %1959 = vmatprep.subr.bf16.mxu1 %v3288_v11 }
 0x12e   :  { %2468 = vmatpush1.bf16.msra.mxu0 %v3379_v12 }
 0x12f   :  { %2469 = vmatprep.subr.bf16.mxu0 %v3384_v22  ;;  %v3397_v22 = vld [vmem:[#allocation7 + $0x120] ss:$8 sps:$4 sm:$0xff]  }
 0x130   :  { %1960 = vmatpush1.bf16.msra.mxu1 %v3286_v13 }
 0x131   :  { %1961 = vmatprep.subr.bf16.mxu1 %v3291_v14 }
 0x134   :  { %1962 = vmatpush1.bf16.msra.mxu1 %v3289_v15 }
 0x135   :  { %1963 = vmatprep.subr.bf16.mxu1 %v3294_v16 }
 0x138   :  { %1964 = vmatpush1.bf16.msra.mxu1 %v3292_v18 }
 0x139   :  { %1976 = vmatprep.subr.bf16.mxu1 %v3297_v19 }
 0x13b   :  { %1966 = vmatmul.mubr.bf16.vlgmr.msra.gmra.mrb[4].mxu1 %v3617_v17  ;;  %v3310_v17 = vld [vmem:[#allocation5 + $0x6a8] ss:$16 sps:$4 sm:$0xff]  }
 0x13c   :  { %1977 = vmatpush1.bf16.msra.mxu1 %v3295_v20  ;;  %2008 = vmatprep.mubr.bf16.mxu1 %v3627_v26  ;;  %v3382_v26 = vld [vmem:[#allocation7 + $0xd0] ss:$8 sps:$4 sm:$0xff]  }
 0x13d   :  { %1978 = vmatprep.subr.bf16.mxu1 %v3300_v21  ;;  %2470 = vmatpush1.bf16.msra.mxu0 %v3382_v26  ;;  %v3400_v26 = vld [vmem:[#allocation7 + $0x130] ss:$8 sps:$4 sm:$0xff]  }
 0x13e   :  { %2471 = vmatprep.subr.bf16.mxu0 %v3387_v36  ;;  %v3411_v36 = vld [vmem:[#allocation7 + $0x164] ss:$8 sps:$4 sm:$0xff]  }
 0x140   :  { %1979 = vmatpush1.bf16.msra.mxu1 %v3298_v24 }
 0x141   :  { %1980 = vmatprep.subr.bf16.mxu1 %v3303_v25  ;;  %2472 = vmatpush1.bf16.msra.mxu0 %v3385_v56  ;;  %v3412_v56 = vld [vmem:[#allocation7 + $0x170] ss:$8 sps:$4 sm:$0xff]  }
 0x142   :  { %2473 = vmatprep.subr.bf16.mxu0 %v3390_v40  ;;  %v3415_v40 = vld [vmem:[#allocation7 + $0x180] ss:$8 sps:$4 sm:$0xff]  }
 0x144   :  { %1981 = vmatpush1.bf16.msra.mxu1 %v3301_v28 }
 0x145   :  { %1982 = vmatprep.subr.bf16.mxu1 %v3306_v29  ;;  %2474 = vmatpush1.bf16.msra.mxu0 %v3388_v42  ;;  %v3418_v42 = vld [vmem:[#allocation7 + $0x190] ss:$8 sps:$4 sm:$0xff]  }
 0x146   :  { %2486 = vmatprep.subr.bf16.mxu0 %v3393_v45  ;;  %v3426_v45 = vld [vmem:[#allocation7 + $0x1b4] ss:$8 sps:$4 sm:$0xff]  }
 0x148   :  { %1983 = vmatpush1.bf16.msra.mxu1 %v3304_v30 }
 0x149   :  { %1984 = vmatprep.subr.bf16.mxu1 %v3309_v9  ;;  %v3391_v9 = vld [vmem:[#allocation7 + $0x100] ss:$8 sps:$4 sm:$0xff]  }
 0x14c   :  { %1985 = vmatpush1.bf16.msra.mxu1 %v3307_v31  ;;  %v3396_v31 = vld [vmem:[#allocation7 + $0x114] ss:$8 sps:$4 sm:$0xff]  }
 0x14d   :  { %1986 = vmatprep.subr.bf16.mxu1 %v3312_v32  ;;  %v3394_v32 = vld [vmem:[#allocation7 + $0x110] ss:$8 sps:$4 sm:$0xff]  }
 0x14e   :  { %v3640_v33 = vpop.f32.mrb[0].mxu1 }
 0x14f   :  { %v3642_v34 = vpop.f32.mrb[1].mxu1  ;;  %v1710_v2 = vadd.f32 %v3640_v33, %v338_v1  ;;  %v3405_v33 = vld [vmem:[#allocation7 + $0x144] ss:$8 sps:$4 sm:$0xff]  }
 0x150   :  { %v3644_v10 = vpop.f32.mrb[2].mxu1  ;;  %1987 = vmatpush1.bf16.msra.mxu1 %v3310_v17  ;;  %v3399_v17 = vld [vmem:[#allocation7 + $0x124] ss:$8 sps:$4 sm:$0xff]  }
 0x151   :  { %v1715_v39 = vpop.f32.mrb[3].mxu1  ;;  %1988 = vmatprep.subr.bf16.mxu1 %v3315_v23  ;;  %v1714_v5 = vadd.f32 %v3644_v10, %v338_v1  ;;  %v3402_v23 = vld [vmem:[#allocation7 + $0x134] ss:$8 sps:$4 sm:$0xff]  }
 0x152   :  { %v3408_v10 = vld [vmem:[#allocation7 + $0x154] ss:$8 sps:$4 sm:$0xff]  }
 0x154   :  { %1989 = vmatpush1.bf16.msra.mxu1 %v3313_v35  ;;  %v3406_v35 = vld [vmem:[#allocation7 + $0x150] ss:$8 sps:$4 sm:$0xff]  }
 0x155   :  { %1990 = vmatprep.subr.bf16.mxu1 %v3318_v37  ;;  %v3414_v37 = vld [vmem:[#allocation7 + $0x174] ss:$8 sps:$4 sm:$0xff]  }
 0x158   :  { %1991 = vmatpush1.bf16.msra.mxu1 %v3316_v38  ;;  %v3417_v38 = vld [vmem:[#allocation7 + $0x184] ss:$8 sps:$4 sm:$0xff]  }
 0x159   :  { %1992 = vmatprep.subr.bf16.mxu1 %v3321_v41  ;;  %v3420_v41 = vld [vmem:[#allocation7 + $0x194] ss:$8 sps:$4 sm:$0xff]  }
 0x15c   :  { %1993 = vmatpush1.bf16.msra.mxu1 %v3319_v43  ;;  %v3423_v43 = vld [vmem:[#allocation7 + $0x1a4] ss:$8 sps:$4 sm:$0xff]  }
 0x15d   :  { %1994 = vmatprep.subr.bf16.mxu1 %v3324_v44  ;;  %v3421_v44 = vld [vmem:[#allocation7 + $0x1a0] ss:$8 sps:$4 sm:$0xff]  }
 0x160   :  { %1995 = vmatpush1.bf16.msra.mxu1 %v3322_v46  ;;  %v3424_v46 = vld [vmem:[#allocation7 + $0x1b0] ss:$8 sps:$4 sm:$0xff]  }
 0x161   :  { %1996 = vmatprep.subr.bf16.mxu1 %v3327_v47  ;;  %v3429_v47 = vld [vmem:[#allocation7 + $0x1c4] ss:$8 sps:$4 sm:$0xff]  }
 0x164   :  { %1997 = vmatpush1.bf16.msra.mxu1 %v3325_v48  ;;  %v3427_v48 = vld [vmem:[#allocation7 + $0x1c0] ss:$8 sps:$4 sm:$0xff]  }
 0x165   :  { %1998 = vmatprep.subr.bf16.mxu1 %v3330_v49  ;;  %v3432_v49 = vld [vmem:[#allocation7 + $0x1d4] ss:$8 sps:$4 sm:$0xff]  }
 0x168   :  { %1999 = vmatpush1.bf16.msra.mxu1 %v3328_v50  ;;  %v3430_v50 = vld [vmem:[#allocation7 + $0x1d0] ss:$8 sps:$4 sm:$0xff]  }
 0x169   :  { %2000 = vmatprep.subr.bf16.mxu1 %v3333_v51  ;;  %v3435_v51 = vld [vmem:[#allocation7 + $0x1e4] ss:$8 sps:$4 sm:$0xff]  }
 0x16c   :  { %2001 = vmatpush1.bf16.msra.mxu1 %v3331_v52  ;;  %v3433_v52 = vld [vmem:[#allocation7 + $0x1e0] ss:$8 sps:$4 sm:$0xff]  }
 0x16d   :  { %2002 = vmatprep.subr.bf16.mxu1 %v3336_v53  ;;  %v3438_v53 = vld [vmem:[#allocation7 + $0x1f4] ss:$8 sps:$4 sm:$0xff]  }
 0x170   :  { %2003 = vmatpush1.bf16.msra.mxu1 %v3334_v54  ;;  %v3436_v54 = vld [vmem:[#allocation7 + $0x1f0] ss:$8 sps:$4 sm:$0xff]  }
 0x171   :  { %2004 = vmatprep.subr.bf16.mxu1 %v3339_v55  ;;  %v345_v55 = vsub.s32 2, %v3647_v61 }
 0x174   :  { %2005 = vmatpush1.bf16.msra.mxu1 %v3337_v57  ;;  %v349_v57 = vsub.s32 3, %v3647_v61 }
 0x175   :  { %2006 = vmatprep.subr.bf16.mxu1 %v3342_v58  ;;  %v346_v58 = vrot.slane %v3655_v63, %v345_v55 }
 0x178   :  { %2007 = vmatpush1.bf16.msra.mxu1 %v3340_v59  ;;  %v350_v59 = vrot.slane %v3655_v63, %v349_v57 }
 0x17b   :  { %2009 = vmatmul.mubr.bf16.vlgmr.msra.gmra.mrb[4].mxu1 %v3633_v27  ;;  %v342_v27 = vrot.slane %v3655_v63, %v3658_v0 }
 0x17d   :  { %v1712_v3 = vadd.f32 %v3642_v34, %v342_v27  ;;  %v1716_v8 = vadd.f32 %v1715_v39, %v342_v27  ;;  %v3403_v34 = vld [vmem:[#allocation7 + $0x140] ss:$8 sps:$4 sm:$0xff]  }
 0x17e   :  { %v3409_v39 = vld [vmem:[#allocation7 + $0x160] ss:$8 sps:$4 sm:$0xff]  }
 0x1cf   :  { %v1838_v4 = vpop.f32.mrb[0].mxu0 }
 0x1d0   :  { %v2911_v6 = vadd.f32 %v1838_v4, %v1710_v2  ;;  %v1840_v7 = vpop.f32.mrb[1].mxu0 }
 0x1d1   :  { %v2913_v11 = vadd.f32 %v1840_v7, %v1712_v3  ;;  %v1842_v12 = vpop.f32.mrb[2].mxu0 }
 0x1d2   :  { %v2027_v13 = vmul.f32 0.2, %v2911_v6  ;;  %v2915_v14 = vadd.f32 %v1842_v12, %v1714_v5  ;;  %v1844_v15 = vpop.f32.mrb[3].mxu0  ;;  %vm2019_vm0 = vcmp.gt.f32.partialorder %v2911_v6, 0.0 }
 0x1d3   :  { %v2028_v16 = vmul.f32 0.2, %v2913_v11  ;;  %v2917_v18 = vadd.f32 %v1844_v15, %v1716_v8  ;;  %vm2020_vm1 = vcmp.gt.f32.partialorder %v2913_v11, 0.0 }
 0x1d4   :  { %vm2023_vm2 = vcmp.gt.f32.partialorder %v2915_v14, 0.0  ;;  %v2031_v19 = vmul.f32 0.2, %v2915_v14  ;;  %v2035_v21 = vsel %vm2019_vm0, %v2911_v6, %v2027_v13 }
 0x1d5   :  { %vm2024_vm3 = vcmp.gt.f32.partialorder %v2917_v18, 0.0  ;;  %v2032_v20 = vmul.f32 0.2, %v2917_v18  ;;  %v2036_v28 = vsel %vm2020_vm1, %v2913_v11, %v2028_v16 }
 0x1d6   :  { %v2039_v24 = vsel %vm2023_vm2, %v2915_v14, %v2031_v19 }
 0x1d7   :  { %v2043_v25 = vpack.c.bf16 %v2039_v24, %v2035_v21  ;;  %v2040_v29 = vsel %vm2024_vm3, %v2917_v18, %v2032_v20  ;;  %v2111_v18 = vld [vmem:[%s3691_s4] sm:$0x3] }
 0x1d8   :  { %v2044_v30 = vpack.c.bf16 %v2040_v29, %v2036_v28  ;;  %v2116_v19 = vrot.slane %v2111_v18, %v3650_v62  ;;  %v2120_v20 = vrot.slane %v2111_v18, %v3658_v0  ;;  %v2541_v21 = vld [vmem:[%s3692_s5] sm:$0x3] }
 0x1da   :  { %2475 = vmatprep.mubr.bf16.mxu0 %v2044_v30 }
 0x1db   :  { %2476 = vmatmul.mubr.bf16.vlgmr.msra.gmra.mrb[4].mxu0 %v2043_v25 }
 0x1dc   :  { %2487 = vmatpush1.bf16.msra.mxu0 %v3391_v9  ;;  %v2546_v9 = vrot.slane %v2541_v21, %v3650_v62 }
 0x1dd   :  { %2488 = vmatprep.subr.bf16.mxu0 %v3396_v31 }
 0x1e0   :  { %2489 = vmatpush1.bf16.msra.mxu0 %v3394_v32 }
 0x1e1   :  { %2490 = vmatprep.subr.bf16.mxu0 %v3399_v17 }
 0x1e4   :  { %2491 = vmatpush1.bf16.msra.mxu0 %v3397_v22  ;;  %v2550_v22 = vrot.slane %v2541_v21, %v3658_v0  ;;  %v2909_v0 = vld [vmem:[#allocation2] ss:$0 sm:$0xff] }
 0x1e5   :  { %2492 = vmatprep.subr.bf16.mxu0 %v3402_v23 }
 0x1e8   :  { %2493 = vmatpush1.bf16.msra.mxu0 %v3400_v26 }
 0x1e9   :  { %2494 = vmatprep.subr.bf16.mxu0 %v3405_v33 }
 0x1ec   :  { %2495 = vmatpush1.bf16.msra.mxu0 %v3403_v34 }
 0x1ed   :  { %2496 = vmatprep.subr.bf16.mxu0 %v3408_v10 }
 0x1f0   :  { %2497 = vmatpush1.bf16.msra.mxu0 %v3406_v35 }
 0x1f1   :  { %2498 = vmatprep.subr.bf16.mxu0 %v3411_v36 }
 0x1f4   :  { %2499 = vmatpush1.bf16.msra.mxu0 %v3409_v39 }
 0x1f5   :  { %2500 = vmatprep.subr.bf16.mxu0 %v3414_v37 }
 0x1f8   :  { %2501 = vmatpush1.bf16.msra.mxu0 %v3412_v56 }
 0x1f9   :  { %2502 = vmatprep.subr.bf16.mxu0 %v3417_v38 }
 0x1fc   :  { %2503 = vmatpush1.bf16.msra.mxu0 %v3415_v40 }
 0x1fd   :  { %2504 = vmatprep.subr.bf16.mxu0 %v3420_v41 }
 0x200   :  { %2505 = vmatpush1.bf16.msra.mxu0 %v3418_v42 }
 0x201   :  { %2506 = vmatprep.subr.bf16.mxu0 %v3423_v43 }
 0x204   :  { %2507 = vmatpush1.bf16.msra.mxu0 %v3421_v44 }
 0x205   :  { %2508 = vmatprep.subr.bf16.mxu0 %v3426_v45 }
 0x208   :  { %2509 = vmatpush1.bf16.msra.mxu0 %v3424_v46 }
 0x209   :  { %2510 = vmatprep.subr.bf16.mxu0 %v3429_v47 }
 0x20c   :  { %2511 = vmatpush1.bf16.msra.mxu0 %v3427_v48 }
 0x20d   :  { %2512 = vmatprep.subr.bf16.mxu0 %v3432_v49 }
 0x210   :  { %2513 = vmatpush1.bf16.msra.mxu0 %v3430_v50 }
 0x211   :  { %2514 = vmatprep.subr.bf16.mxu0 %v3435_v51 }
 0x214   :  { %2515 = vmatpush1.bf16.msra.mxu0 %v3433_v52 }
 0x215   :  { %2516 = vmatprep.subr.bf16.mxu0 %v3438_v53 }
 0x218   :  { %2517 = vmatpush1.bf16.msra.mxu0 %v3436_v54 }
 0x24e   :  { %v2010_v60 = vpop.f32.mrb[4].mxu1 }
 0x24f   :  { %v2918_v1 = vadd.f32 %v2010_v60, %v346_v58  ;;  %v2012_v27 = vpop.f32.mrb[5].mxu1 }
 0x250   :  { %v2919_v2 = vadd.f32 %v2012_v27, %v350_v59  ;;  %v2014_v3 = vpop.f32.mrb[6].mxu1 }
 0x251   :  { %v2029_v4 = vmul.f32 0.2, %v2918_v1  ;;  %v2920_v5 = vadd.f32 %v2014_v3, %v346_v58  ;;  %v2016_v6 = vpop.f32.mrb[7].mxu1  ;;  %vm2021_vm4 = vcmp.gt.f32.partialorder %v2918_v1, 0.0 }
 0x252   :  { %v2030_v7 = vmul.f32 0.2, %v2919_v2  ;;  %v2921_v8 = vadd.f32 %v2016_v6, %v350_v59  ;;  %vm2022_vm5 = vcmp.gt.f32.partialorder %v2919_v2, 0.0 }
 0x253   :  { %vm2025_vm6 = vcmp.gt.f32.partialorder %v2920_v5, 0.0  ;;  %v2033_v11 = vmul.f32 0.2, %v2920_v5  ;;  %v2037_v12 = vsel %vm2021_vm4, %v2918_v1, %v2029_v4 }
 0x254   :  { %vm2026_vm7 = vcmp.gt.f32.partialorder %v2921_v8, 0.0  ;;  %v2034_v61 = vmul.f32 0.2, %v2921_v8  ;;  %v2038_v63 = vsel %vm2022_vm5, %v2919_v2, %v2030_v7 }
 0x255   :  { %v2041_v13 = vsel %vm2025_vm6, %v2920_v5, %v2033_v11 }
 0x256   :  { %v2045_v14 = vpack.c.bf16 %v2041_v13, %v2037_v12  ;;  %v2042_v15 = vsel %vm2026_vm7, %v2921_v8, %v2034_v61 }
 0x257   :  { %v2046_v16 = vpack.c.bf16 %v2042_v15, %v2038_v63 }
 0x259   :  { %2518 = vmatprep.mubr.bf16.mxu0 %v2046_v16 }
 0x25a   :  { %2519 = vmatmul.mubr.bf16.vlgmr.msra.gmra.mrb[4].mxu0 %v2045_v14 }
 0x32d   :  { %v2520_v24 = vpop.f32.mrb[4].mxu0 }
 0x32e   :  { %v2922_v25 = vadd.f32 %v2520_v24, %v2116_v19  ;;  %v2522_v28 = vpop.f32.mrb[5].mxu0 }
 0x32f   :  { %v2923_v29 = vadd.f32 %v2522_v28, %v2120_v20  ;;  %v2524_v30 = vpop.f32.mrb[6].mxu0 }
 0x330   :  { %vm2529_vm8 = vcmp.gt.f32.partialorder %v2922_v25, 0.0  ;;  %v2533_v31 = vmul.f32 0.2, %v2922_v25  ;;  %v2924_v32 = vadd.f32 %v2524_v30, %v2116_v19  ;;  %v2526_v17 = vpop.f32.mrb[7].mxu0 }
 0x331   :  { %vm2530_vm9 = vcmp.gt.f32.partialorder %v2923_v29, 0.0  ;;  %v2534_v23 = vmul.f32 0.2, %v2923_v29  ;;  %v2925_v26 = vadd.f32 %v2526_v17, %v2120_v20 }
 0x332   :  { %vm2531_vm10 = vcmp.gt.f32.partialorder %v2924_v32, 0.0  ;;  %v2535_v33 = vmul.f32 0.2, %v2924_v32  ;;  %v2537_v34 = vsel %vm2529_vm8, %v2922_v25, %v2533_v31 }
 0x333   :  { %vm2532_vm11 = vcmp.gt.f32.partialorder %v2925_v26, 0.0  ;;  %v2536_v10 = vmul.f32 0.2, %v2925_v26  ;;  %v2538_v35 = vsel %vm2530_vm9, %v2923_v29, %v2534_v23  ;;  %v2553_v36 = vmul.f32 %v2546_v9, %v2537_v34 }
 0x334   :  { %v2554_v39 = vmul.f32 %v2550_v22, %v2538_v35  ;;  %v2539_v37 = vsel %vm2531_vm10, %v2924_v32, %v2535_v33 }
 0x335   :  { %v2540_v56 = vsel %vm2532_vm11, %v2925_v26, %v2536_v10  ;;  %v2555_v62 = vmul.f32 %v2546_v9, %v2539_v37 }
 0x336   :  { %v2557_v38 = vadd.f32 %v2554_v39, %v2553_v36  ;;  %v2556_v40 = vmul.f32 %v2550_v22, %v2540_v56 }
 0x338   :  { %2558 = vadd.xlane.f32.xlu0 %v2557_v38  ;;  %v2560_v41 = vadd.f32 %v2556_v40, %v2555_v62 }
 0x33c   :  { %2561 = vadd.xlane.f32.xlu0 %v2560_v41 }
 0x3c5   :  { %v2559_v42 = vpop.xlane.xlu0 %2558 }
 0x3c6   :  { %v2570_v43 = vadd.f32 %v2909_v0, %v2559_v42 }
 0x3c8   :  { %2573 = vst.msk [vmem:[%s3694_s7] sm:$0xff] %vm2572_vm12, %v2570_v43 }
 0x3c9   :  { %v2562_v44 = vpop.xlane.xlu0 %2561 }
 0x3ca   :  { %v2571_v45 = vadd.f32 %v2909_v0, %v2562_v44 }
 0x3cc   :  { %2574 = vst.msk [vmem:[%s3694_s7 + $0x8] sm:$0xff] %vm2572_vm12, %v2571_v45 }
 0x3cd   :  { %2579 = vsyncpa [#allocation4], 1 }
 0x3ce   :  { %2580 = vsyncpa [#allocation6], 1 }

</bundles_post_ra>
